<compile_context>
chip_gen: v7x
topology: tpu7x:2x2x1
jax: 0.10.0
libtpu: 0.0.40
codegen_flags: <defaults>
</compile_context>

<pallas_src>
import functools

import jax
import jax.numpy as jnp
from jax.experimental import pallas as pl
from jax.experimental.pallas import tpu as pltpu


def _j_index(hop, h, k):
    """Index into w_n for the k-th accumulated term of the chain started at hop h."""
    return h * hop - h * (h - 1) // 2 + k


def _dense_norm_prop(edge_index, edge_weight, num_nodes, fill_value):
    """Glue: dense equivalent of Conv_Base(fill_value) message passing (conv(x) == P @ x)."""
    src = edge_index[0]
    dst = edge_index[1]
    a = jnp.zeros((num_nodes, num_nodes), jnp.float32).at[src, dst].add(
        edge_weight.astype(jnp.float32))
    # add_remaining_self_loops: only for nodes without an existing self-loop edge.
    self_mask = (src == dst).astype(jnp.float32)
    has_self = jnp.zeros((num_nodes,), jnp.float32).at[src].add(self_mask) > 0
    a = a + jnp.diag(jnp.where(has_self, 0.0, jnp.float32(fill_value)))
    deg = a.sum(axis=1)                               # out-degree of source nodes
    deg_inv = jnp.where(deg == 0.0, 0.0, 1.0 / deg)
    p = deg_inv[:, None] * a                          # D_out^{-1} (A + fill*I)
    # aggregation is at the target node: out = P^T @ x
    return p.T


def _simpa_kernel(H, D, TM, n_pad, sched_ref, pp_ref, pn_ref, xp_ref, xn_ref,
                  out_ref, s_read, s_write, fp_acc, fn_acc):
    """One grid step = (hop pass t0, P row-block rb).

    State buffer layout (W = (2 + H) * D columns, f32, full N rows, scratch):
      group 0          : curr_n_aux
      group 1          : curr_p
      group 2 + h      : negative chain started at pass h + 1
    """
    W = (2 + H) * D
    S = 3 + H                                   # sched stride per pass
    t0 = pl.program_id(0)                       # hop pass, 0-based (pass = t0 + 1)
    rb = pl.program_id(1)                       # P row-block index
    rows = pl.ds(pl.multiple_of(rb * TM, TM), TM)

    # ---- state init / handoff: first row block of each pass -----------------
    @pl.when(jnp.logical_and(t0 == 0, rb == 0))
    def _init_state():
        s_read[:, 0:D] = xn_ref[...]            # curr_n_aux  <- x_n
        s_read[:, D:2 * D] = xp_ref[...]        # curr_p      <- x_p
        s_read[:, 2 * D:] = jnp.zeros((n_pad, H * D), jnp.float32)

    @pl.when(jnp.logical_and(t0 > 0, rb == 0))
    def _advance_state():
        s_read[...] = s_write[...]              # previous pass becomes current

    # ---- per-row-block feature accumulator init (first pass only) -----------
    @pl.when(t0 == 0)
    def _init_feat():
        wp0 = sched_ref[t0 * S + 2]
        fp_acc[rows, :] = wp0 * xp_ref[rows, :]
        fn_acc[rows, :] = jnp.zeros((TM, D), jnp.float32)

    # ---- fused propagation ---------------------------------------------------
    # One P_pos matmul covers curr_p, curr_n_aux and every live negative chain
    # (shared LHS, lane-packed RHS); one narrow P_neg matmul starts this pass'
    # negative chain from the *previous* aux (matching the reference order).
    cdt = pp_ref.dtype                          # bf16 (default perf path) or f32
    rhs = s_read[...].astype(cdt)               # (n_pad, W)
    pos = jnp.dot(pp_ref[...], rhs, preferred_element_type=jnp.float32)        # (TM, W)
    neg = jnp.dot(pn_ref[...], rhs[:, 0:D], preferred_element_type=jnp.float32)  # (TM, D)

    # ---- weighted accumulation (f32) ----------------------------------------
    fp = fp_acc[rows, :] + sched_ref[t0 * S + 0] * pos[:, D:2 * D]
    fn = fn_acc[rows, :] + sched_ref[t0 * S + 1] * neg
    for h in range(H):                          # static unroll, H is tiny
        fn = fn + sched_ref[t0 * S + 3 + h] * pos[:, (2 + h) * D:(3 + h) * D]
    fp_acc[rows, :] = fp
    fn_acc[rows, :] = fn

    # ---- next state: pos result, chain started this pass replaced by neg ----
    parts = []
    for g in range(2 + H):
        pg = pos[:, g * D:(g + 1) * D]
        if g >= 2:
            pg = jnp.where(t0 == g - 2, neg, pg)
        parts.append(pg)
    s_write[rows, :] = jnp.concatenate(parts, axis=1)

    # ---- lane-dense output slab [feat_p | feat_n] ----------------------------
    # (revisited across the pass axis; the final pass' write is the one that
    #  survives in HBM)
    out_ref[...] = jnp.concatenate([fp, fn], axis=1)


def simpa_forward(edge_index_p, edge_weight_p, edge_index_n, edge_weight_n,
                  x_p, x_n, *, hop, fill_value, w_p=None, w_n=None,
                  p_dtype=jnp.bfloat16, tm=256):
    """Undirected SIMPA forward.  Returns (N, 2*D) = cat([feat_p, feat_n], dim=1)."""
    hop_p = hop + 1
    hop_n = (1 + hop) * hop // 2
    n, d = x_p.shape
    if w_p is None:
        w_p = jnp.ones((hop_p,), jnp.float32)   # module init fills params with 1.0
    if w_n is None:
        w_n = jnp.ones((max(hop_n, 1),), jnp.float32)

    if hop == 0:                                # no propagation at all
        feat_p = w_p[0] * x_p.astype(jnp.float32)
        return jnp.concatenate([feat_p, jnp.zeros_like(feat_p)], axis=1)

    assert tm % 128 == 0, "row block must stay (8,128)/MXU aligned"
    n_pad = -(-n // tm) * tm
    pad = n_pad - n

    p_pos = _dense_norm_prop(edge_index_p, edge_weight_p, n, fill_value)
    p_neg = _dense_norm_prop(edge_index_n, edge_weight_n, n, 0.0)
    p_pos = jnp.pad(p_pos, ((0, pad), (0, pad))).astype(p_dtype)
    p_neg = jnp.pad(p_neg, ((0, pad), (0, pad))).astype(p_dtype)
    xp_pad = jnp.pad(x_p.astype(jnp.float32), ((0, pad), (0, 0)))
    xn_pad = jnp.pad(x_n.astype(jnp.float32), ((0, pad), (0, 0)))

    # Static per-pass weight schedule, flattened for SMEM:
    #   [0] w_p[t]   (curr_p term)      [1] w_n[...] (fresh neg chain term)
    #   [2] w_p[0]   (t0==0 feat init)  [3+h] w_n[...] (chain-h pos update term)
    S = 3 + hop
    sched = jnp.zeros((hop * S,), jnp.float32)
    for t0 in range(hop):
        sched = sched.at[t0 * S + 0].set(w_p[t0 + 1])
        sched = sched.at[t0 * S + 1].set(w_n[_j_index(hop, t0, 0)])
        sched = sched.at[t0 * S + 2].set(w_p[0])
        for h in range(t0):
            sched = sched.at[t0 * S + 3 + h].set(w_n[_j_index(hop, h, t0 - h)])

    W = (2 + hop) * d
    grid = (hop, n_pad // tm)
    kernel = functools.partial(_simpa_kernel, hop, d, tm, n_pad)

    feat = pl.pallas_call(
        kernel,
        out_shape=jax.ShapeDtypeStruct((n_pad, 2 * d), jnp.float32),
        grid_spec=pltpu.PrefetchScalarGridSpec(
            num_scalar_prefetch=0,
            grid=grid,
            in_specs=[
                pl.BlockSpec(memory_space=pltpu.MemorySpace.SMEM),      # sched table
                pl.BlockSpec((tm, n_pad), lambda t, r: (r, 0)),         # P_pos row block
                pl.BlockSpec((tm, n_pad), lambda t, r: (r, 0)),         # P_neg row block
                pl.BlockSpec((n_pad, d), lambda t, r: (0, 0)),          # x_p (resident)
                pl.BlockSpec((n_pad, d), lambda t, r: (0, 0)),          # x_n (resident)
            ],
            out_specs=pl.BlockSpec((tm, 2 * d), lambda t, r: (r, 0)),
            scratch_shapes=[
                pltpu.VMEM((n_pad, W), jnp.float32),    # state, read side
                pltpu.VMEM((n_pad, W), jnp.float32),    # state, write side
                pltpu.VMEM((n_pad, d), jnp.float32),    # feat_p accumulator
                pltpu.VMEM((n_pad, d), jnp.float32),    # feat_n accumulator
            ]),
        compiler_params=pltpu.CompilerParams(
            # Row blocks share the sequential hop state via scratch -> not
            # megacore-parallel.  TODO(synk): v7x 2-TC split (VMEM_SHARED state).
            dimension_semantics=("arbitrary", "arbitrary"),
            vmem_limit_bytes=48 * 1024 * 1024),
    )(sched, p_pos, p_neg, xp_pad, xn_pad)

    return feat[:n]


def simpa_reference(edge_index_p, edge_weight_p, edge_index_n, edge_weight_n,
                    x_p, x_n, *, hop, fill_value, w_p=None, w_n=None):
    """Pure-JAX reference mirroring the PyTorch forward (undirected branch)."""
    hop_p = hop + 1
    hop_n = (1 + hop) * hop // 2
    n, _ = x_p.shape
    if w_p is None:
        w_p = jnp.ones((hop_p,), jnp.float32)
    if w_n is None:
        w_n = jnp.ones((max(hop_n, 1),), jnp.float32)
    p_pos = _dense_norm_prop(edge_index_p, edge_weight_p, n, fill_value)
    p_neg = _dense_norm_prop(edge_index_n, edge_weight_n, n, 0.0)

    mm = functools.partial(jnp.dot, precision=jax.lax.Precision.HIGHEST)
    feat_p = w_p[0] * x_p
    feat_n = jnp.zeros_like(feat_p)
    curr_p = x_p
    curr_n_aux = x_n
    j = 0
    for h in range(hop_p):
        if h > 0:
            curr_p = mm(p_pos, curr_p)
            curr_n_aux = mm(p_pos, curr_n_aux)
            feat_p = feat_p + w_p[h] * curr_p
        if h != hop_p - 1:
            curr_n = mm(p_neg, curr_n_aux)
            feat_n = feat_n + w_n[j] * curr_n
            j += 1
            for _ in range(hop_p - 2 - h):
                curr_n = mm(p_pos, curr_n)
                feat_n = feat_n + w_n[j] * curr_n
                j += 1
    return jnp.concatenate([feat_p, feat_n], axis=1)


if __name__ == "__main__":
    key = jax.random.PRNGKey(0)
    k1, k2, k3, k4, k5, k6 = jax.random.split(key, 6)

    N = 130          # not a multiple of the row block -> exercises padding + 2 row blocks
    D = 16
    E = 400
    FILL_VALUE = 0.5
    TM = 128

    edge_index_p = jax.random.randint(k1, (2, E), 0, N, dtype=jnp.int32)
    edge_index_n = jax.random.randint(k2, (2, E), 0, N, dtype=jnp.int32)
    edge_weight_p = jax.random.uniform(k3, (E,), jnp.float32, 0.1, 1.0)
    edge_weight_n = jax.random.uniform(k4, (E,), jnp.float32, 0.1, 1.0)
    x_p = jax.random.normal(k5, (N, D), jnp.float32)
    x_n = jax.random.normal(k6, (N, D), jnp.float32)

    # 1) exact-semantics check: f32-streamed P vs. the PyTorch-mirroring reference.
    feat_f32 = jax.block_until_ready(simpa_forward(
        edge_index_p, edge_weight_p, edge_index_n, edge_weight_n, x_p, x_n,
        hop=2, fill_value=FILL_VALUE, p_dtype=jnp.float32, tm=TM))
    ref2 = jax.block_until_ready(simpa_reference(
        edge_index_p, edge_weight_p, edge_index_n, edge_weight_n, x_p, x_n,
        hop=2, fill_value=FILL_VALUE))
    assert feat_f32.shape == (N, 2 * D), feat_f32.shape
    assert jnp.allclose(feat_f32, ref2, atol=5e-4, rtol=5e-4), \
        float(jnp.max(jnp.abs(feat_f32 - ref2)))

    # 2) perf configuration: bf16-streamed P (HBM bytes halved), f32 accumulation.
    #    bf16 quantization of the propagation weights -> loose tolerance.
    feat_bf16 = jax.block_until_ready(simpa_forward(
        edge_index_p, edge_weight_p, edge_index_n, edge_weight_n, x_p, x_n,
        hop=2, fill_value=FILL_VALUE, p_dtype=jnp.bfloat16, tm=TM))
    assert feat_bf16.shape == (N, 2 * D), feat_bf16.shape
    assert jnp.allclose(feat_bf16, ref2, atol=5e-2, rtol=5e-2), \
        float(jnp.max(jnp.abs(feat_bf16 - ref2)))

    # 3) deeper hop count exercises the full mixed-path chain schedule.
    feat_h3 = jax.block_until_ready(simpa_forward(
        edge_index_p, edge_weight_p, edge_index_n, edge_weight_n, x_p, x_n,
        hop=3, fill_value=FILL_VALUE, p_dtype=jnp.float32, tm=TM))
    ref3 = jax.block_until_ready(simpa_reference(
        edge_index_p, edge_weight_p, edge_index_n, edge_weight_n, x_p, x_n,
        hop=3, fill_value=FILL_VALUE))
    assert jnp.allclose(feat_h3, ref3, atol=5e-4, rtol=5e-4), \
        float(jnp.max(jnp.abs(feat_h3 - ref3)))

    print("KERNEL_OK")
</pallas_src>

<mosaic_0001>
module attributes {stable_mosaic.version = 11 : i64} {
  func.func @_simpa_kernel(%arg0: i32, %arg1: i32, %arg2: memref<10xf32, #tpu.memory_space<smem>>, %arg3: memref<128x256xf32, #tpu.memory_space<vmem>>, %arg4: memref<128x256xf32, #tpu.memory_space<vmem>>, %arg5: memref<256x16xf32, #tpu.memory_space<vmem>>, %arg6: memref<256x16xf32, #tpu.memory_space<vmem>>, %arg7: memref<128x32xf32, #tpu.memory_space<vmem>>, %arg8: memref<256x64xf32, #tpu.memory_space<vmem>>, %arg9: memref<256x64xf32, #tpu.memory_space<vmem>>, %arg10: memref<256x16xf32, #tpu.memory_space<vmem>>, %arg11: memref<256x16xf32, #tpu.memory_space<vmem>>) attributes {dimension_semantics = [#tpu.dimension_semantics<arbitrary>, #tpu.dimension_semantics<arbitrary>], iteration_bounds = array<i64: 2, 2>, scalar_prefetch = 0 : i64, scratch_operands = 4 : i64, tpu.core_type = #tpu.core_type<tc>, window_params = [{transform_indices = @transform_0, window_bounds = array<i64: 10>}, {transform_indices = @transform_1, window_bounds = array<i64: 128, 256>}, {transform_indices = @transform_2, window_bounds = array<i64: 128, 256>}, {pipeline_mode = #tpu.pipeline_mode<synchronous>, transform_indices = @transform_3, window_bounds = array<i64: 256, 16>}, {pipeline_mode = #tpu.pipeline_mode<synchronous>, transform_indices = @transform_4, window_bounds = array<i64: 256, 16>}, {transform_indices = @transform_5, window_bounds = array<i64: 128, 32>}]} {
    %c128_i32 = arith.constant 128 : i32
    %0 = arith.muli %arg1, %c128_i32 : i32
    %1 = tpu.assume_multiple %0, 128 : i32
    %c0_i32 = arith.constant 0 : i32
    %2 = arith.cmpi eq, %arg0, %c0_i32 : i32
    %c0_i32_0 = arith.constant 0 : i32
    %3 = arith.cmpi eq, %arg1, %c0_i32_0 : i32
    %4 = arith.andi %2, %3 : i1
    %5 = arith.extui %4 : i1 to i32
    %c0_i32_1 = arith.constant 0 : i32
    %6 = arith.cmpi ne, %5, %c0_i32_1 : i32
    scf.if %6 {
      %c0_29 = arith.constant 0 : index
      %c0_30 = arith.constant 0 : index
      %75 = vector.load %arg6[%c0_29, %c0_30] : memref<256x16xf32, #tpu.memory_space<vmem>>, vector<256x16xf32>
      %c0_31 = arith.constant 0 : index
      %c0_32 = arith.constant 0 : index
      %76 = vector.load %arg8[%c0_31, %c0_32] : memref<256x64xf32, #tpu.memory_space<vmem>>, vector<256x16xf32>
      tpu.vector_store %arg8[%c0_31, %c0_32], %75 {strides = array<i32>} : memref<256x64xf32, #tpu.memory_space<vmem>>, vector<256x16xf32>,
      %c0_33 = arith.constant 0 : index
      %c0_34 = arith.constant 0 : index
      %77 = vector.load %arg5[%c0_33, %c0_34] : memref<256x16xf32, #tpu.memory_space<vmem>>, vector<256x16xf32>
      %c0_35 = arith.constant 0 : index
      %c16 = arith.constant 16 : index
      %78 = vector.load %arg8[%c0_35, %c16] : memref<256x64xf32, #tpu.memory_space<vmem>>, vector<256x16xf32>
      tpu.vector_store %arg8[%c0_35, %c16], %77 {strides = array<i32>} : memref<256x64xf32, #tpu.memory_space<vmem>>, vector<256x16xf32>,
      %cst_36 = arith.constant 0.000000e+00 : f32
      %79 = vector.broadcast %cst_36 : f32 to vector<256x32xf32>
      %c0_37 = arith.constant 0 : index
      %c32 = arith.constant 32 : index
      %80 = vector.load %arg8[%c0_37, %c32] : memref<256x64xf32, #tpu.memory_space<vmem>>, vector<256x32xf32>
      tpu.vector_store %arg8[%c0_37, %c32], %79 {strides = array<i32>} : memref<256x64xf32, #tpu.memory_space<vmem>>, vector<256x32xf32>,
    } else {
    }
    %c0_i32_2 = arith.constant 0 : i32
    %7 = arith.cmpi sgt, %arg0, %c0_i32_2 : i32
    %c0_i32_3 = arith.constant 0 : i32
    %8 = arith.cmpi eq, %arg1, %c0_i32_3 : i32
    %9 = arith.andi %7, %8 : i1
    %10 = arith.extui %9 : i1 to i32
    %c0_i32_4 = arith.constant 0 : i32
    %11 = arith.cmpi ne, %10, %c0_i32_4 : i32
    scf.if %11 {
      %c0_29 = arith.constant 0 : index
      %c0_30 = arith.constant 0 : index
      %75 = vector.load %arg9[%c0_29, %c0_30] : memref<256x64xf32, #tpu.memory_space<vmem>>, vector<256x64xf32>
      %c0_31 = arith.constant 0 : index
      %c0_32 = arith.constant 0 : index
      %76 = vector.load %arg8[%c0_31, %c0_32] : memref<256x64xf32, #tpu.memory_space<vmem>>, vector<256x64xf32>
      tpu.vector_store %arg8[%c0_31, %c0_32], %75 {strides = array<i32>} : memref<256x64xf32, #tpu.memory_space<vmem>>, vector<256x64xf32>,
    } else {
    }
    %c0_i32_5 = arith.constant 0 : i32
    %12 = arith.cmpi eq, %arg0, %c0_i32_5 : i32
    %13 = arith.extui %12 : i1 to i32
    %c0_i32_6 = arith.constant 0 : i32
    %14 = arith.cmpi ne, %13, %c0_i32_6 : i32
    scf.if %14 {
      %c5_i32_29 = arith.constant 5 : i32
      %75 = arith.muli %arg0, %c5_i32_29 : i32
      %c2_i32 = arith.constant 2 : i32
      %76 = arith.addi %75, %c2_i32 : i32
      %77 = arith.index_cast %76 : i32 to index
      %78 = memref.load %arg2[%77] : memref<10xf32, #tpu.memory_space<smem>>
      %79 = arith.index_cast %1 : i32 to index
      %c0_30 = arith.constant 0 : index
      %80 = vector.load %arg5[%79, %c0_30] : memref<256x16xf32, #tpu.memory_space<vmem>>, vector<128x16xf32>
      %81 = vector.broadcast %78 : f32 to vector<128x16xf32>
      %82 = arith.mulf %81, %80 : vector<128x16xf32>
      %83 = arith.index_cast %1 : i32 to index
      %c0_31 = arith.constant 0 : index
      %84 = vector.load %arg10[%83, %c0_31] : memref<256x16xf32, #tpu.memory_space<vmem>>, vector<128x16xf32>
      tpu.vector_store %arg10[%83, %c0_31], %82 {strides = array<i32>} : memref<256x16xf32, #tpu.memory_space<vmem>>, vector<128x16xf32>,
      %cst_32 = arith.constant 0.000000e+00 : f32
      %85 = vector.broadcast %cst_32 : f32 to vector<128x16xf32>
      %86 = arith.index_cast %1 : i32 to index
      %c0_33 = arith.constant 0 : index
      %87 = vector.load %arg11[%86, %c0_33] : memref<256x16xf32, #tpu.memory_space<vmem>>, vector<128x16xf32>
      tpu.vector_store %arg11[%86, %c0_33], %85 {strides = array<i32>} : memref<256x16xf32, #tpu.memory_space<vmem>>, vector<128x16xf32>,
    } else {
    }
    %c0 = arith.constant 0 : index
    %c0_7 = arith.constant 0 : index
    %15 = vector.load %arg8[%c0, %c0_7] : memref<256x64xf32, #tpu.memory_space<vmem>>, vector<256x64xf32>
    %c0_8 = arith.constant 0 : index
    %c0_9 = arith.constant 0 : index
    %16 = vector.load %arg3[%c0_8, %c0_9] : memref<128x256xf32, #tpu.memory_space<vmem>>, vector<128x256xf32>
    %cst = arith.constant dense<0.000000e+00> : vector<128x64xf32>
    %17 = tpu.matmul %16, %15, %cst {dimension_numbers = #tpu.dot_dimension_numbers<[1], [0], [0], [1], [0, 0, 1, 1], [], []>} : vector<128x256xf32>, vector<256x64xf32>, vector<128x64xf32> -> vector<128x64xf32>
    %c0_10 = arith.constant 0 : index
    %c0_11 = arith.constant 0 : index
    %18 = vector.load %arg4[%c0_10, %c0_11] : memref<128x256xf32, #tpu.memory_space<vmem>>, vector<128x256xf32>
    %19 = vector.extract_strided_slice %15 {offsets = [0, 0], sizes = [256, 16], strides = [1, 1]} : vector<256x64xf32> to vector<256x16xf32>
    %cst_12 = arith.constant dense<0.000000e+00> : vector<128x16xf32>
    %20 = tpu.matmul %18, %19, %cst_12 {dimension_numbers = #tpu.dot_dimension_numbers<[1], [0], [0], [1], [0, 0, 1, 1], [], []>} : vector<128x256xf32>, vector<256x16xf32>, vector<128x16xf32> -> vector<128x16xf32>
    %21 = arith.index_cast %1 : i32 to index
    %c0_13 = arith.constant 0 : index
    %22 = vector.load %arg10[%21, %c0_13] : memref<256x16xf32, #tpu.memory_space<vmem>>, vector<128x16xf32>
    %c5_i32 = arith.constant 5 : i32
    %23 = arith.muli %arg0, %c5_i32 : i32
    %c0_i32_14 = arith.constant 0 : i32
    %24 = arith.addi %23, %c0_i32_14 : i32
    %25 = arith.index_cast %24 : i32 to index
    %26 = memref.load %arg2[%25] : memref<10xf32, #tpu.memory_space<smem>>
    %27 = vector.extract_strided_slice %17 {offsets = [0, 16], sizes = [128, 16], strides = [1, 1]} : vector<128x64xf32> to vector<128x16xf32>
    %28 = vector.broadcast %26 : f32 to vector<128x16xf32>
    %29 = arith.mulf %28, %27 : vector<128x16xf32>
    %30 = arith.addf %22, %29 : vector<128x16xf32>
    %31 = arith.index_cast %1 : i32 to index
    %c0_15 = arith.constant 0 : index
    %32 = vector.load %arg11[%31, %c0_15] : memref<256x16xf32, #tpu.memory_space<vmem>>, vector<128x16xf32>
    %c5_i32_16 = arith.constant 5 : i32
    %33 = arith.muli %arg0, %c5_i32_16 : i32
    %c1_i32 = arith.constant 1 : i32
    %34 = arith.addi %33, %c1_i32 : i32
    %35 = arith.index_cast %34 : i32 to index
    %36 = memref.load %arg2[%35] : memref<10xf32, #tpu.memory_space<smem>>
    %37 = vector.broadcast %36 : f32 to vector<128x16xf32>
    %38 = arith.mulf %37, %20 : vector<128x16xf32>
    %39 = arith.addf %32, %38 : vector<128x16xf32>
    %c5_i32_17 = arith.constant 5 : i32
    %40 = arith.muli %arg0, %c5_i32_17 : i32
    %c3_i32 = arith.constant 3 : i32
    %41 = arith.addi %40, %c3_i32 : i32
    %c0_i32_18 = arith.constant 0 : i32
    %42 = arith.addi %41, %c0_i32_18 : i32
    %43 = arith.index_cast %42 : i32 to index
    %44 = memref.load %arg2[%43] : memref<10xf32, #tpu.memory_space<smem>>
    %45 = vector.extract_strided_slice %17 {offsets = [0, 32], sizes = [128, 16], strides = [1, 1]} : vector<128x64xf32> to vector<128x16xf32>
    %46 = vector.broadcast %44 : f32 to vector<128x16xf32>
    %47 = arith.mulf %46, %45 : vector<128x16xf32>
    %48 = arith.addf %39, %47 : vector<128x16xf32>
    %c5_i32_19 = arith.constant 5 : i32
    %49 = arith.muli %arg0, %c5_i32_19 : i32
    %c3_i32_20 = arith.constant 3 : i32
    %50 = arith.addi %49, %c3_i32_20 : i32
    %c1_i32_21 = arith.constant 1 : i32
    %51 = arith.addi %50, %c1_i32_21 : i32
    %52 = arith.index_cast %51 : i32 to index
    %53 = memref.load %arg2[%52] : memref<10xf32, #tpu.memory_space<smem>>
    %54 = vector.extract_strided_slice %17 {offsets = [0, 48], sizes = [128, 16], strides = [1, 1]} : vector<128x64xf32> to vector<128x16xf32>
    %55 = vector.broadcast %53 : f32 to vector<128x16xf32>
    %56 = arith.mulf %55, %54 : vector<128x16xf32>
    %57 = arith.addf %48, %56 : vector<128x16xf32>
    %58 = arith.index_cast %1 : i32 to index
    %c0_22 = arith.constant 0 : index
    %59 = vector.load %arg10[%58, %c0_22] : memref<256x16xf32, #tpu.memory_space<vmem>>, vector<128x16xf32>
    tpu.vector_store %arg10[%58, %c0_22], %30 {strides = array<i32>} : memref<256x16xf32, #tpu.memory_space<vmem>>, vector<128x16xf32>,
    %60 = arith.index_cast %1 : i32 to index
    %c0_23 = arith.constant 0 : index
    %61 = vector.load %arg11[%60, %c0_23] : memref<256x16xf32, #tpu.memory_space<vmem>>, vector<128x16xf32>
    tpu.vector_store %arg11[%60, %c0_23], %57 {strides = array<i32>} : memref<256x16xf32, #tpu.memory_space<vmem>>, vector<128x16xf32>,
    %62 = vector.extract_strided_slice %17 {offsets = [0, 0], sizes = [128, 16], strides = [1, 1]} : vector<128x64xf32> to vector<128x16xf32>
    %63 = vector.extract_strided_slice %17 {offsets = [0, 16], sizes = [128, 16], strides = [1, 1]} : vector<128x64xf32> to vector<128x16xf32>
    %64 = vector.extract_strided_slice %17 {offsets = [0, 32], sizes = [128, 16], strides = [1, 1]} : vector<128x64xf32> to vector<128x16xf32>
    %c0_i32_24 = arith.constant 0 : i32
    %65 = arith.cmpi eq, %arg0, %c0_i32_24 : i32
    %66 = arith.select %65, %20, %64 : vector<128x16xf32>
    %67 = vector.extract_strided_slice %17 {offsets = [0, 48], sizes = [128, 16], strides = [1, 1]} : vector<128x64xf32> to vector<128x16xf32>
    %c1_i32_25 = arith.constant 1 : i32
    %68 = arith.cmpi eq, %arg0, %c1_i32_25 : i32
    %69 = arith.select %68, %20, %67 : vector<128x16xf32>
    %70 = tpu.concatenate %62, %63, %66, %69 in 1 : vector<128x16xf32>, vector<128x16xf32>, vector<128x16xf32>, vector<128x16xf32> -> vector<128x64xf32>
    %71 = arith.index_cast %1 : i32 to index
    %c0_26 = arith.constant 0 : index
    %72 = vector.load %arg9[%71, %c0_26] : memref<256x64xf32, #tpu.memory_space<vmem>>, vector<128x64xf32>
    tpu.vector_store %arg9[%71, %c0_26], %70 {strides = array<i32>} : memref<256x64xf32, #tpu.memory_space<vmem>>, vector<128x64xf32>,
    %73 = tpu.concatenate %30, %57 in 1 : vector<128x16xf32>, vector<128x16xf32> -> vector<128x32xf32>
    %c0_27 = arith.constant 0 : index
    %c0_28 = arith.constant 0 : index
    %74 = vector.load %arg7[%c0_27, %c0_28] : memref<128x32xf32, #tpu.memory_space<vmem>>, vector<128x32xf32>
    tpu.vector_store %arg7[%c0_27, %c0_28], %73 {strides = array<i32>} : memref<128x32xf32, #tpu.memory_space<vmem>>, vector<128x32xf32>,
    return
  }
  func.func @transform_0(%arg0: i32, %arg1: i32) -> i32 {
    %c0_i32 = arith.constant 0 : i32
    %c0_i32_0 = arith.constant 0 : i32
    return %c0_i32 : i32
  }
  func.func @transform_1(%arg0: i32, %arg1: i32) -> (i32, i32) {
    %c0_i32 = arith.constant 0 : i32
    %c0_i32_0 = arith.constant 0 : i32
    return %arg1, %c0_i32 : i32, i32
  }
  func.func @transform_2(%arg0: i32, %arg1: i32) -> (i32, i32) {
    %c0_i32 = arith.constant 0 : i32
    %c0_i32_0 = arith.constant 0 : i32
    return %arg1, %c0_i32 : i32, i32
  }
  func.func @transform_3(%arg0: i32, %arg1: i32) -> (i32, i32) {
    %c0_i32 = arith.constant 0 : i32
    %c0_i32_0 = arith.constant 0 : i32
    %c0_i32_1 = arith.constant 0 : i32
    return %c0_i32, %c0_i32_0 : i32, i32
  }
  func.func @transform_4(%arg0: i32, %arg1: i32) -> (i32, i32) {
    %c0_i32 = arith.constant 0 : i32
    %c0_i32_0 = arith.constant 0 : i32
    %c0_i32_1 = arith.constant 0 : i32
    return %c0_i32, %c0_i32_0 : i32, i32
  }
  func.func @transform_5(%arg0: i32, %arg1: i32) -> (i32, i32) {
    %c0_i32 = arith.constant 0 : i32
    %c0_i32_0 = arith.constant 0 : i32
    return %arg1, %c0_i32 : i32, i32
  }
}

</mosaic_0001>

<bundles_post_ra>
// kernel: tpu_custom_call.1
= control target key start
LH: loop header
LB: loop body
LE: loop exit
PB: predicated region body
PF: predicated region fallthrough
CT: control target
= control target key end

     0   :  { %10 = vsyncpa [#allocation8], 0  ;;  %s4082_s0 = inlined_call_operand.vmem [shape: f32[10], index: 0, kind: input, shape index: {}]   ;;  %s4083_s1 = inlined_call_operand.vmem [shape: f32[256,256], index: 1, kind: input, shape index: {}]   ;;  %s4084_s2 = inlined_call_operand.hbm [shape: f32[256,256], index: 2, kind: input, shape index: {}]   ;;  %s4085_s3 = inlined_call_operand.vmem [shape: f32[256,16], index: 3, kind: input, shape index: {}]   ;;  %s4086_s4 = inlined_call_operand.vmem [shape: f32[256,16], index: 4, kind: input, shape index: {}]   ;;  %s4087_s5 = inlined_call_operand.vmem [shape: f32[256,32], index: 5, kind: output, shape index: {}]  }
   0x1   :  { %11 = vsyncpa [#allocation7], 0 }
   0x2   :  { %13 = vsyncpa [#allocation7 + $0x1], 0  ;;  %s2570_s18 = smov 0   ;;  %s2572_s19 = smov 0  }
   0x3   :  { %s2574_s20 = smov 0   ;;  %s2576_s21 = smov 0  }
   0x4   :  { %s2578_s22 = smov 0   ;;  %s2580_s23 = smov 0  }
   0x5   :  { %s2582_s24 = smov 0   ;;  %s2584_s25 = smov 0  }
   0x6 LB: > { %s2069_s26 = sadd.s32 4294967295, %s2525_s25   ;;  %s85_s27 = sadd.s32 1, %s2505_s20  ;;  %s2525_s25 = sphi %s2584_s25, %s19_s25   ;;  %s2521_s24 = sphi %s2582_s24, %s4109_s24   ;;  %s2517_s23 = sphi %s2580_s23, %s4108_s23   ;;  %s2513_s22 = sphi %s2578_s22, %s4107_s22   ;;  %s2509_s21 = sphi %s2576_s21, %s4106_s21   ;;  %s2505_s20 = sphi %s2574_s20, %s4105_s20   ;;  %s2501_s19 = sphi %s2572_s19, %s4104_s19   ;;  %s2497_s18 = sphi %s2570_s18, %s4103_s18  }
   0x7   : > { %p92_p0 = scmp.ne.s32.totalorder %s2505_s20, %s2501_s19  ;;  %p93_p1 = scmp.eq.s32.totalorder %s2525_s25, 0 }
   0x8   : > { %p98_p2 = scmp.ne.s32.totalorder %s2501_s19, %s2497_s18  ;;  %p2614_p3 = scmp.eq.s32.totalorder %s2069_s26, 0 }
   0x9   : > { %p94_p4 = por %p93_p1, %p92_p0  ;;  %p2071_p5 = scmp.ge.s32.totalorder %s2525_s25, 1 }
   0xa   : > { %p2621_p6 = por %p2614_p3, %p98_p2  ;;  %p177_p7 = scmp.lt.s32.totalorder %s2525_s25, 5 }
   0xb   : > { %s190_s7 = sshll.u32 %s4082_s0, 4  ;;  %p2332_p10 = scmp.lt.s32.totalorder %s2525_s25, 4  ;;  %s191_s7 = int_to_ptr.vmem [resolvable:$true] %s190_s7 }
   0xc   : > { %s4092_s29 = scalar_select %p2621_p6, 1, 0 }
   0xd   : > { %p2629_p8 = pnand %p2071_p5, %p177_p7  ;;  %p2638_p12 = pnand %p2332_p10, %p94_p4 }
   0xe   : > { %s2410_s10 = scalar_lea.vmem %s191_s7, 16  ;;  %p2418_p5 = scmp.lt.s32.totalorder %s191_s7, %s191_s7 }
   0xf   : > { %s4093_s8 = scalar_select %p2629_p8, 1, 0 }
  0x10   : > { %p2323_p9 = pneg %p2629_p8  ;;  %p2411_p13 = scmp.ne.s32.totalorder %s191_s7, %s2410_s10 }
  0x11   : > { %p2419_p7 = scmp.lt.s32.totalorder %s2410_s10, %s2410_s10 }
  0x12   : > { %p2324_p11 = pnand %p2323_p9, %p2614_p3 }
  0x13   : > { %p2420_p6 = por %p2419_p7, %p2418_p5 }
  0x14   : > { %p2412_p0 = pneg %p2324_p11 }
  0x16   : > { %p2413_p1 = pnand %p2412_p0, %p2411_p13 }
  0x18   : > { %p2414_p2 = pneg %p2413_p1 }
  0x1a   : > { %p2421_p8 = pnand %p2420_p6, %p2414_p2 }
  0x1c   : > { %2424 = shalt.err (!%p2421_p8)
}
  0x1d   : > { %s2527_s11 = smov [#allocation6]   ;;  %s28_s12 = sadd.s32 1, %s2517_s23 }
  0x1e   : > { %2326 = dma.vmem_to_smem (!%p2324_p11), %s191_s7, 16, %s2527_s11, [#allocation8]  }
  0x1f   : > { %s31_s13 = sadd.s32 1, %s2521_s24  ;;  %p29_p4 = scmp.ge.s32.totalorder %s28_s12, 2 }
  0x20   : > { %s217_s14 = sand.u32 1, %s2505_s20   ;;  %s2091_s17 = sshll.u32 %s2517_s23, 12 }
  0x21   : > { %s2074_s15 = sshll.u32 %s217_s14, 8  ;;  %s4111_s12 = smov (%p29_p4, %s28_s12), 0 }
  0x22   : > { %s4113_s13 = smov (!%p29_p4, %s31_s13), %s2521_s24  ;;  %s82_s16 = ssub.s32 %s2517_s23, %s4111_s12 }
  0x23   : > { %p33_p6 = scmp.ge.s32.totalorder %s4113_s13, 2  ;;  %p83_p8 = scmp.eq.s32.totalorder %s82_s16, 0 }
  0x24   : > { %s221_s18 = scalar_lea.vmem [#allocation9], %s2074_s15  ;;  %s2661_s10 = scalar_lea.hbm %s4084_s2, %s2091_s17 }
  0x25   : > { %s229_s26 = sshll.u32 %s221_s18, 4  ;;  %s4115_s13 = smov (%p33_p6, %s4113_s13), 0  ;;  %s2663_s26 = int_to_ptr.vmem [resolvable:$true] %s229_s26 }
  0x26   : > { %s2656_s30 = scalar_select %p83_p8, %s2505_s20, %s85_s27  }
  0x27   : > { %s2665_s11 = scalar_lea.sflag [#allocation7], %s217_s14  ;;  %s2425_s15 = scalar_lea.hbm %s2661_s10, 4096 }
  0x28   : > { %p2426_p9 = scmp.ne.s32.totalorder %s2661_s10, %s2425_s15  ;;  %p2427_p10 = pneg %p2638_p12 }
  0x29   : > { %s2430_s17 = scalar_lea.hbm %s4084_s2, 8192  ;;  %p2431_p0 = scmp.lt.u32.totalorder %s2661_s10, %s4084_s2 }
  0x2a   : > { %p2428_p11 = pnand %p2427_p10, %p2426_p9  ;;  %p2432_p1 = scmp.lt.u32.totalorder %s2430_s17, %s2425_s15 }
  0x2b   : > { %p2434_p5 = scmp.lt.u32.totalorder %s2425_s15, %s2661_s10 }
  0x2c   : > { %p2429_p13 = pneg %p2428_p11  ;;  %p2433_p2 = por %p2432_p1, %p2431_p0 }
  0x2e   : > { %p2435_p7 = por %p2434_p5, %p2433_p2 }
  0x30   : > { %p2436_p4 = pnand %p2435_p7, %p2429_p13 }
  0x32   : > { %2439 = shalt.err (!%p2436_p4)
}
  0x33   : > { %s2440_s14 = scalar_lea.vmem %s2663_s26, 4096  ;;  %s2528_s7 = smov [#allocation9]  }
  0x34   : > { %p2441_p6 = scmp.ne.s32.totalorder %s2663_s26, %s2440_s14  ;;  %s2445_s27 = sshll.u32 %s2528_s7, 4  ;;  %s2446_s27 = int_to_ptr.vmem [resolvable:$false] %s2445_s27 }
  0x35   : > { %s2447_s16 = scalar_lea.vmem %s2446_s27, 8192  ;;  %p2448_p11 = scmp.lt.s32.totalorder %s2663_s26, %s2446_s27 }
  0x36   : > { %p2443_p8 = pnand %p2441_p6, %p2427_p10  ;;  %p2449_p0 = scmp.lt.s32.totalorder %s2447_s16, %s2440_s14 }
  0x38   : > { %p2444_p9 = pneg %p2443_p8  ;;  %p2450_p1 = por %p2449_p0, %p2448_p11 }
  0x3a   : > { %p2451_p2 = pnand %p2450_p1, %p2444_p9 }
  0x3c   : > { %2454 = shalt.err (!%p2451_p2)
}
  0x3d   : > { %s2529_s15 = smov 256   ;;  %s2530_s17 = smov 16  }
  0x3e   : > { %2330 = dma.hbm_to_vmem [thread:$0]  (!%p2638_p12), %s2661_s10, 4096, %s2663_s26, %s2665_s11, %s2529_s15, %s2529_s15, %s2530_s17  }
  0x3f   : > { %p4095_p10 = scmp.ne.s32.totalorder %s4093_s8, 0 }
  0x41   : > { %241 = sbr.rel (%p4095_p10) target bundleno = 949 (0x3b5), region = 40 }
  0x48   : > { %2488 = dma.done.wait (%p2614_p3), [#allocation8], 16  }
  0x49   : > { %2490 = vsyncadd (%p2614_p3), [#allocation8], 4294967280  ;;  %s247_s18 = sand.u32 1, %s2501_s19   ;;  %p4096_p13 = scmp.ne.s32.totalorder %s4092_s29, 0 }
  0x4a   : > { %s2080_s6 = sshll.u32 %s247_s18, 8  ;;  %s248_s14 = scalar_lea.sflag [#allocation7], %s247_s18 }
  0x4b   : > { %s2700_s7 = scalar_lea.vmem [#allocation9], %s2080_s6 }
  0x4c   : > { %2492 = dma.done.wait (%p4096_p13), %s248_s14, 4096  }
  0x4d   : > { %2494 = vsyncadd (%p4096_p13), %s248_s14, 4294963200 }
  0x4e   : > { %256 = sfence }
  0x4f   : > { %s2081_s28 = sshll.u32 %s2509_s21, 4  ;;  %s2708_s8 = sshll.u32 %s2509_s21, 7 }
  0x50   : > { %p286_p3 = scmp.lt.s32.totalorder %s2081_s28, 31  ;;  %p300_p12 = scmp.eq.s32.totalorder %s2513_s22, 0 }
  0x51   : > { %p301_p5 = scmp.eq.s32.totalorder %s2509_s21, 0 }
  0x52   : > { %s4117_s28 = smov (!%p286_p3, %s2081_s28), 31 }
  0x53   : > { %p302_p7 = pnand %p301_p5, %p300_p12  ;;  %s2092_s9 = sshll.u32 %s4117_s28, 4 }
  0x54   : > { %s2085_s29 = sshll.u32 %s4117_s28, 3  ;;  %s2719_s11 = scalar_lea.vmem %s4083_s1, %s2092_s9  ;;  %v373_v0 = vld [vmem:[%s4085_s3 + $0x10] sm:$0xff] (!%p302_p7)  ;;  %v371_v1 = vld [vmem:[%s4085_s3] sm:$0xff] (!%p302_p7)  ;;  %v374_v2 = vld [vmem:[%s4085_s3 + $0x18] sm:$0xff] (!%p302_p7)  ;;  %vm338_vm0 = vcmask (!%p302_p7), 130048   ;;  %vm531_vm1 = vcmask (!%p302_p7), 261248  }
  0x55   : > { %s2724_s15 = scalar_lea.vmem %s4087_s5, %s2085_s29  ;;  %305 = sbr.rel (%p302_p7) target bundleno = 264 (0x108), region = 52  ;;  %v372_v3 = vld [vmem:[%s4085_s3 + $0x8] sm:$0xff] (!%p302_p7)  ;;  %v375_v5 = vld [vmem:[%s4085_s3 + $0x20] sm:$0xff] (!%p302_p7)  ;;  %v378_v6 = vld [vmem:[%s4085_s3 + $0x38] sm:$0xff] (!%p302_p7)  ;;  %vm564_vm2 = vcmask (!%p302_p7), 523520  }
  0x56   : > { %s2531_s28 = smov (!%p302_p7), 16   ;;  %v376_v4 = vld [vmem:[%s4085_s3 + $0x28] sm:$0xff] (!%p302_p7)  ;;  %v377_v7 = vld [vmem:[%s4085_s3 + $0x30] sm:$0xff] (!%p302_p7)  ;;  %v379_v10 = vld [vmem:[%s4085_s3 + $0x40] sm:$0xff] (!%p302_p7) }
  0x57   : > { %439 = vrot.lane.b32.xlu1 (!%p302_p7), %v373_v0, %s2531_s28  ;;  %435 = vrot.lane.b32.xlu0 (!%p302_p7), %v371_v1, %s2531_s28  ;;  %v308_v8 = vld [vmem:[%s4086_s4 + $0x10] sm:$0xff] (!%p302_p7)  ;;  %v380_v9 = vld [vmem:[%s4085_s3 + $0x48] sm:$0xff] (!%p302_p7) }
  0x58   : > { %341 = vst.msk [vmem:[#allocation2 + $0x10] sm:$0xff] (!%p302_p7), %vm338_vm0, %v308_v8  ;;  %v306_v11 = vld [vmem:[%s4086_s4] sm:$0xff] (!%p302_p7)  ;;  %v309_v12 = vld [vmem:[%s4086_s4 + $0x18] sm:$0xff] (!%p302_p7)  ;;  %v307_v13 = vld [vmem:[%s4086_s4 + $0x8] sm:$0xff] (!%p302_p7) }
  0x59   : > { %339 = vst.msk [vmem:[#allocation2] sm:$0xff] (!%p302_p7), %vm338_vm0, %v306_v11  ;;  %342 = vst.msk [vmem:[#allocation2 + $0x18] sm:$0xff] (!%p302_p7), %vm338_vm0, %v309_v12  ;;  %v311_v14 = vld [vmem:[%s4086_s4 + $0x28] sm:$0xff] (!%p302_p7)  ;;  %v310_v15 = vld [vmem:[%s4086_s4 + $0x20] sm:$0xff] (!%p302_p7) }
  0x5a   : > { %340 = vst.msk [vmem:[#allocation2 + $0x8] sm:$0xff] (!%p302_p7), %vm338_vm0, %v307_v13  ;;  %344 = vst.msk [vmem:[#allocation2 + $0x28] sm:$0xff] (!%p302_p7), %vm338_vm0, %v311_v14  ;;  %v313_v16 = vld [vmem:[%s4086_s4 + $0x38] sm:$0xff] (!%p302_p7)  ;;  %v312_v17 = vld [vmem:[%s4086_s4 + $0x30] sm:$0xff] (!%p302_p7) }
  0x5b   : > { %441 = vrot.lane.b32.xlu1 (!%p302_p7), %v374_v2, %s2531_s28  ;;  %437 = vrot.lane.b32.xlu0 (!%p302_p7), %v372_v3, %s2531_s28  ;;  %343 = vst.msk [vmem:[#allocation2 + $0x20] sm:$0xff] (!%p302_p7), %vm338_vm0, %v310_v15  ;;  %v315_v18 = vld [vmem:[%s4086_s4 + $0x48] sm:$0xff] (!%p302_p7)  ;;  %346 = vst.msk [vmem:[#allocation2 + $0x38] sm:$0xff] (!%p302_p7), %vm338_vm0, %v313_v16  ;;  %v314_v19 = vld [vmem:[%s4086_s4 + $0x40] sm:$0xff] (!%p302_p7)  ;;  %v2532_v2 = vmov (!%p302_p7), 0.0  }
  0x5c   : > { %345 = vst.msk [vmem:[#allocation2 + $0x30] sm:$0xff] %vm338_vm0, %v312_v17  ;;  %348 = vst.msk [vmem:[#allocation2 + $0x48] sm:$0xff] %vm338_vm0, %v315_v18  ;;  %v317_v20 = vld [vmem:[%s4086_s4 + $0x58] sm:$0xff]  ;;  %v316_v21 = vld [vmem:[%s4086_s4 + $0x50] sm:$0xff] }
  0x5d   : > { %347 = vst.msk [vmem:[#allocation2 + $0x40] sm:$0xff] %vm338_vm0, %v314_v19  ;;  %350 = vst.msk [vmem:[#allocation2 + $0x58] sm:$0xff] %vm338_vm0, %v317_v20  ;;  %v319_v22 = vld [vmem:[%s4086_s4 + $0x68] sm:$0xff]  ;;  %v318_v23 = vld [vmem:[%s4086_s4 + $0x60] sm:$0xff] }
  0x5e   : > { %349 = vst.msk [vmem:[#allocation2 + $0x50] sm:$0xff] %vm338_vm0, %v316_v21  ;;  %v321_v24 = vld [vmem:[%s4086_s4 + $0x78] sm:$0xff]  ;;  %352 = vst.msk [vmem:[#allocation2 + $0x68] sm:$0xff] %vm338_vm0, %v319_v22  ;;  %v320_v26 = vld [vmem:[%s4086_s4 + $0x70] sm:$0xff] }
  0x5f   : > { %445 = vrot.lane.b32.xlu1 %v376_v4, %s2531_s28  ;;  %443 = vrot.lane.b32.xlu0 %v375_v5, %s2531_s28  ;;  %v382_v25 = vld [vmem:[%s4085_s3 + $0x58] sm:$0xff]  ;;  %351 = vst.msk [vmem:[#allocation2 + $0x60] sm:$0xff] %vm338_vm0, %v318_v23  ;;  %354 = vst.msk [vmem:[#allocation2 + $0x78] sm:$0xff] %vm338_vm0, %v321_v24  ;;  %v381_v27 = vld [vmem:[%s4085_s3 + $0x50] sm:$0xff] }
  0x60   : > { %353 = vst.msk [vmem:[#allocation2 + $0x70] sm:$0xff] %vm338_vm0, %v320_v26  ;;  %v323_v28 = vld [vmem:[%s4086_s4 + $0x88] sm:$0xff]  ;;  %v322_v29 = vld [vmem:[%s4086_s4 + $0x80] sm:$0xff]  ;;  %v325_v32 = vld [vmem:[%s4086_s4 + $0x98] sm:$0xff] }
  0x61   : > { %356 = vst.msk [vmem:[#allocation2 + $0x88] sm:$0xff] %vm338_vm0, %v323_v28  ;;  %355 = vst.msk [vmem:[#allocation2 + $0x80] sm:$0xff] %vm338_vm0, %v322_v29  ;;  %v384_v30 = vld [vmem:[%s4085_s3 + $0x68] sm:$0xff]  ;;  %v383_v31 = vld [vmem:[%s4085_s3 + $0x60] sm:$0xff] }
  0x62   : > { %v324_v33 = vld [vmem:[%s4086_s4 + $0x90] sm:$0xff]  ;;  %358 = vst.msk [vmem:[#allocation2 + $0x98] sm:$0xff] %vm338_vm0, %v325_v32  ;;  %v386_v34 = vld [vmem:[%s4085_s3 + $0x78] sm:$0xff]  ;;  %v327_v36 = vld [vmem:[%s4086_s4 + $0xa8] sm:$0xff] }
  0x63   : > { %449 = vrot.lane.b32.xlu1 %v378_v6, %s2531_s28  ;;  %447 = vrot.lane.b32.xlu0 %v377_v7, %s2531_s28  ;;  %357 = vst.msk [vmem:[#allocation2 + $0x90] sm:$0xff] %vm338_vm0, %v324_v33  ;;  %v385_v35 = vld [vmem:[%s4085_s3 + $0x70] sm:$0xff]  ;;  %v326_v37 = vld [vmem:[%s4086_s4 + $0xa0] sm:$0xff]  ;;  %360 = vst.msk [vmem:[#allocation2 + $0xa8] sm:$0xff] %vm338_vm0, %v327_v36 }
  0x64   : > { %359 = vst.msk [vmem:[#allocation2 + $0xa0] sm:$0xff] %vm338_vm0, %v326_v37  ;;  %v388_v38 = vld [vmem:[%s4085_s3 + $0x88] sm:$0xff]  ;;  %v387_v39 = vld [vmem:[%s4085_s3 + $0x80] sm:$0xff]  ;;  %v329_v40 = vld [vmem:[%s4086_s4 + $0xb8] sm:$0xff] }
  0x65   : > { %v328_v41 = vld [vmem:[%s4086_s4 + $0xb0] sm:$0xff]  ;;  %362 = vst.msk [vmem:[#allocation2 + $0xb8] sm:$0xff] %vm338_vm0, %v329_v40  ;;  %v390_v42 = vld [vmem:[%s4085_s3 + $0x98] sm:$0xff]  ;;  %v331_v44 = vld [vmem:[%s4086_s4 + $0xc8] sm:$0xff] }
  0x66   : > { %361 = vst.msk [vmem:[#allocation2 + $0xb0] sm:$0xff] %vm338_vm0, %v328_v41  ;;  %v389_v43 = vld [vmem:[%s4085_s3 + $0x90] sm:$0xff]  ;;  %v330_v45 = vld [vmem:[%s4086_s4 + $0xc0] sm:$0xff]  ;;  %364 = vst.msk [vmem:[#allocation2 + $0xc8] sm:$0xff] %vm338_vm0, %v331_v44 }
  0x67   : > { %453 = vrot.lane.b32.xlu1 %v380_v9, %s2531_s28  ;;  %451 = vrot.lane.b32.xlu0 %v379_v10, %s2531_s28  ;;  %363 = vst.msk [vmem:[#allocation2 + $0xc0] sm:$0xff] %vm338_vm0, %v330_v45  ;;  %v392_v46 = vld [vmem:[%s4085_s3 + $0xa8] sm:$0xff]  ;;  %v391_v47 = vld [vmem:[%s4085_s3 + $0xa0] sm:$0xff] }
  0x68   : > { %v333_v48 = vld [vmem:[%s4086_s4 + $0xd8] sm:$0xff]  ;;  %v332_v49 = vld [vmem:[%s4086_s4 + $0xd0] sm:$0xff]  ;;  %v335_v52 = vld [vmem:[%s4086_s4 + $0xe8] sm:$0xff] }
  0x69   : > { %366 = vst.msk [vmem:[#allocation2 + $0xd8] sm:$0xff] %vm338_vm0, %v333_v48  ;;  %365 = vst.msk [vmem:[#allocation2 + $0xd0] sm:$0xff] %vm338_vm0, %v332_v49  ;;  %v394_v50 = vld [vmem:[%s4085_s3 + $0xb8] sm:$0xff]  ;;  %v393_v51 = vld [vmem:[%s4085_s3 + $0xb0] sm:$0xff] }
  0x6a   : > { %v334_v53 = vld [vmem:[%s4086_s4 + $0xe0] sm:$0xff]  ;;  %368 = vst.msk [vmem:[#allocation2 + $0xe8] sm:$0xff] %vm338_vm0, %v335_v52  ;;  %v396_v54 = vld [vmem:[%s4085_s3 + $0xc8] sm:$0xff]  ;;  %v337_v56 = vld [vmem:[%s4086_s4 + $0xf8] sm:$0xff] }
  0x6b   : > { %457 = vrot.lane.b32.xlu1 %v382_v25, %s2531_s28  ;;  %455 = vrot.lane.b32.xlu0 %v381_v27, %s2531_s28  ;;  %367 = vst.msk [vmem:[#allocation2 + $0xe0] sm:$0xff] %vm338_vm0, %v334_v53  ;;  %v395_v55 = vld [vmem:[%s4085_s3 + $0xc0] sm:$0xff]  ;;  %v336_v57 = vld [vmem:[%s4086_s4 + $0xf0] sm:$0xff]  ;;  %370 = vst.msk [vmem:[#allocation2 + $0xf8] sm:$0xff] %vm338_vm0, %v337_v56 }
  0x6c   : > { %369 = vst.msk [vmem:[#allocation2 + $0xf0] sm:$0xff] %vm338_vm0, %v336_v57  ;;  %v398_v58 = vld [vmem:[%s4085_s3 + $0xd8] sm:$0xff]  ;;  %v397_v59 = vld [vmem:[%s4085_s3 + $0xd0] sm:$0xff]  ;;  %v400_v60 = vld [vmem:[%s4085_s3 + $0xe8] sm:$0xff] }
  0x6d   : > { %v399_v61 = vld [vmem:[%s4085_s3 + $0xe0] sm:$0xff]  ;;  %v402_v62 = vld [vmem:[%s4085_s3 + $0xf8] sm:$0xff]  ;;  %v401_v63 = vld [vmem:[%s4085_s3 + $0xf0] sm:$0xff] }
  0x6f   : > { %461 = vrot.lane.b32.xlu1 %v384_v30, %s2531_s28  ;;  %459 = vrot.lane.b32.xlu0 %v383_v31, %s2531_s28 }
  0x73   : > { %465 = vrot.lane.b32.xlu1 %v386_v34, %s2531_s28  ;;  %463 = vrot.lane.b32.xlu0 %v385_v35, %s2531_s28 }
  0x77   : > { %469 = vrot.lane.b32.xlu1 %v388_v38, %s2531_s28  ;;  %467 = vrot.lane.b32.xlu0 %v387_v39, %s2531_s28 }
  0x7b   : > { %473 = vrot.lane.b32.xlu1 %v390_v42, %s2531_s28  ;;  %471 = vrot.lane.b32.xlu0 %v389_v43, %s2531_s28 }
  0x7f   : > { %477 = vrot.lane.b32.xlu1 %v392_v46, %s2531_s28  ;;  %475 = vrot.lane.b32.xlu0 %v391_v47, %s2531_s28 }
  0x83   : > { %481 = vrot.lane.b32.xlu1 %v394_v50, %s2531_s28  ;;  %479 = vrot.lane.b32.xlu0 %v393_v51, %s2531_s28 }
  0x87   : > { %485 = vrot.lane.b32.xlu1 %v396_v54, %s2531_s28  ;;  %483 = vrot.lane.b32.xlu0 %v395_v55, %s2531_s28 }
  0x8b   : > { %489 = vrot.lane.b32.xlu1 %v398_v58, %s2531_s28  ;;  %487 = vrot.lane.b32.xlu0 %v397_v59, %s2531_s28 }
  0x8f   : > { %493 = vrot.lane.b32.xlu1 %v400_v60, %s2531_s28  ;;  %491 = vrot.lane.b32.xlu0 %v399_v61, %s2531_s28 }
  0x93   : > { %497 = vrot.lane.b32.xlu1 %v402_v62, %s2531_s28  ;;  %495 = vrot.lane.b32.xlu0 %v401_v63, %s2531_s28 }
  0xc9   : > { %v440_v0 = vpop.permute.xlu1 %439  ;;  %v436_v1 = vpop.permute.xlu0 %435 }
  0xca   : > { %534 = vst.msk [vmem:[#allocation2 + $0x10] sm:$0xff] %vm531_vm1, %v440_v0  ;;  %532 = vst.msk [vmem:[#allocation2] sm:$0xff] %vm531_vm1, %v436_v1 }
  0xcb   : > { %567 = vst.msk [vmem:[#allocation2 + $0x10] sm:$0xff] %vm564_vm2, %v2532_v2  ;;  %565 = vst.msk [vmem:[#allocation2] sm:$0xff] %vm564_vm2, %v2532_v2 }
  0xcd   : > { %v442_v3 = vpop.permute.xlu1 %441  ;;  %v438_v4 = vpop.permute.xlu0 %437 }
  0xce   : > { %535 = vst.msk [vmem:[#allocation2 + $0x18] sm:$0xff] %vm531_vm1, %v442_v3  ;;  %533 = vst.msk [vmem:[#allocation2 + $0x8] sm:$0xff] %vm531_vm1, %v438_v4 }
  0xcf   : > { %568 = vst.msk [vmem:[#allocation2 + $0x18] sm:$0xff] %vm564_vm2, %v2532_v2  ;;  %566 = vst.msk [vmem:[#allocation2 + $0x8] sm:$0xff] %vm564_vm2, %v2532_v2 }
  0xd1   : > { %v446_v5 = vpop.permute.xlu1 %445  ;;  %v444_v6 = vpop.permute.xlu0 %443 }
  0xd2   : > { %537 = vst.msk [vmem:[#allocation2 + $0x28] sm:$0xff] %vm531_vm1, %v446_v5  ;;  %536 = vst.msk [vmem:[#allocation2 + $0x20] sm:$0xff] %vm531_vm1, %v444_v6 }
  0xd3   : > { %570 = vst.msk [vmem:[#allocation2 + $0x28] sm:$0xff] %vm564_vm2, %v2532_v2  ;;  %569 = vst.msk [vmem:[#allocation2 + $0x20] sm:$0xff] %vm564_vm2, %v2532_v2 }
  0xd5   : > { %v450_v7 = vpop.permute.xlu1 %449  ;;  %v448_v8 = vpop.permute.xlu0 %447 }
  0xd6   : > { %539 = vst.msk [vmem:[#allocation2 + $0x38] sm:$0xff] %vm531_vm1, %v450_v7  ;;  %538 = vst.msk [vmem:[#allocation2 + $0x30] sm:$0xff] %vm531_vm1, %v448_v8 }
  0xd7   : > { %572 = vst.msk [vmem:[#allocation2 + $0x38] sm:$0xff] %vm564_vm2, %v2532_v2  ;;  %571 = vst.msk [vmem:[#allocation2 + $0x30] sm:$0xff] %vm564_vm2, %v2532_v2 }
  0xd9   : > { %v454_v9 = vpop.permute.xlu1 %453  ;;  %v452_v10 = vpop.permute.xlu0 %451 }
  0xda   : > { %541 = vst.msk [vmem:[#allocation2 + $0x48] sm:$0xff] %vm531_vm1, %v454_v9  ;;  %540 = vst.msk [vmem:[#allocation2 + $0x40] sm:$0xff] %vm531_vm1, %v452_v10 }
  0xdb   : > { %574 = vst.msk [vmem:[#allocation2 + $0x48] sm:$0xff] %vm564_vm2, %v2532_v2  ;;  %573 = vst.msk [vmem:[#allocation2 + $0x40] sm:$0xff] %vm564_vm2, %v2532_v2 }
  0xdd   : > { %v458_v11 = vpop.permute.xlu1 %457  ;;  %v456_v12 = vpop.permute.xlu0 %455 }
  0xde   : > { %543 = vst.msk [vmem:[#allocation2 + $0x58] sm:$0xff] %vm531_vm1, %v458_v11  ;;  %542 = vst.msk [vmem:[#allocation2 + $0x50] sm:$0xff] %vm531_vm1, %v456_v12 }
  0xdf   : > { %576 = vst.msk [vmem:[#allocation2 + $0x58] sm:$0xff] %vm564_vm2, %v2532_v2  ;;  %575 = vst.msk [vmem:[#allocation2 + $0x50] sm:$0xff] %vm564_vm2, %v2532_v2 }
  0xe1   : > { %v462_v13 = vpop.permute.xlu1 %461  ;;  %v460_v14 = vpop.permute.xlu0 %459 }
  0xe2   : > { %545 = vst.msk [vmem:[#allocation2 + $0x68] sm:$0xff] %vm531_vm1, %v462_v13  ;;  %544 = vst.msk [vmem:[#allocation2 + $0x60] sm:$0xff] %vm531_vm1, %v460_v14 }
  0xe3   : > { %578 = vst.msk [vmem:[#allocation2 + $0x68] sm:$0xff] %vm564_vm2, %v2532_v2  ;;  %577 = vst.msk [vmem:[#allocation2 + $0x60] sm:$0xff] %vm564_vm2, %v2532_v2 }
  0xe5   : > { %v466_v15 = vpop.permute.xlu1 %465  ;;  %v464_v16 = vpop.permute.xlu0 %463 }
  0xe6   : > { %547 = vst.msk [vmem:[#allocation2 + $0x78] sm:$0xff] %vm531_vm1, %v466_v15  ;;  %546 = vst.msk [vmem:[#allocation2 + $0x70] sm:$0xff] %vm531_vm1, %v464_v16 }
  0xe7   : > { %580 = vst.msk [vmem:[#allocation2 + $0x78] sm:$0xff] %vm564_vm2, %v2532_v2  ;;  %579 = vst.msk [vmem:[#allocation2 + $0x70] sm:$0xff] %vm564_vm2, %v2532_v2 }
  0xe9   : > { %v470_v17 = vpop.permute.xlu1 %469  ;;  %v468_v18 = vpop.permute.xlu0 %467 }
  0xea   : > { %549 = vst.msk [vmem:[#allocation2 + $0x88] sm:$0xff] %vm531_vm1, %v470_v17  ;;  %548 = vst.msk [vmem:[#allocation2 + $0x80] sm:$0xff] %vm531_vm1, %v468_v18 }
  0xeb   : > { %582 = vst.msk [vmem:[#allocation2 + $0x88] sm:$0xff] %vm564_vm2, %v2532_v2  ;;  %581 = vst.msk [vmem:[#allocation2 + $0x80] sm:$0xff] %vm564_vm2, %v2532_v2 }
  0xed   : > { %v474_v19 = vpop.permute.xlu1 %473  ;;  %v472_v20 = vpop.permute.xlu0 %471 }
  0xee   : > { %551 = vst.msk [vmem:[#allocation2 + $0x98] sm:$0xff] %vm531_vm1, %v474_v19  ;;  %550 = vst.msk [vmem:[#allocation2 + $0x90] sm:$0xff] %vm531_vm1, %v472_v20 }
  0xef   : > { %584 = vst.msk [vmem:[#allocation2 + $0x98] sm:$0xff] %vm564_vm2, %v2532_v2  ;;  %583 = vst.msk [vmem:[#allocation2 + $0x90] sm:$0xff] %vm564_vm2, %v2532_v2 }
  0xf1   : > { %v478_v21 = vpop.permute.xlu1 %477  ;;  %v476_v22 = vpop.permute.xlu0 %475 }
  0xf2   : > { %553 = vst.msk [vmem:[#allocation2 + $0xa8] sm:$0xff] %vm531_vm1, %v478_v21  ;;  %552 = vst.msk [vmem:[#allocation2 + $0xa0] sm:$0xff] %vm531_vm1, %v476_v22 }
  0xf3   : > { %586 = vst.msk [vmem:[#allocation2 + $0xa8] sm:$0xff] %vm564_vm2, %v2532_v2  ;;  %585 = vst.msk [vmem:[#allocation2 + $0xa0] sm:$0xff] %vm564_vm2, %v2532_v2 }
  0xf5   : > { %v482_v23 = vpop.permute.xlu1 %481  ;;  %v480_v24 = vpop.permute.xlu0 %479 }
  0xf6   : > { %555 = vst.msk [vmem:[#allocation2 + $0xb8] sm:$0xff] %vm531_vm1, %v482_v23  ;;  %554 = vst.msk [vmem:[#allocation2 + $0xb0] sm:$0xff] %vm531_vm1, %v480_v24 }
  0xf7   : > { %588 = vst.msk [vmem:[#allocation2 + $0xb8] sm:$0xff] %vm564_vm2, %v2532_v2  ;;  %587 = vst.msk [vmem:[#allocation2 + $0xb0] sm:$0xff] %vm564_vm2, %v2532_v2 }
  0xf9   : > { %v486_v25 = vpop.permute.xlu1 %485  ;;  %v484_v26 = vpop.permute.xlu0 %483 }
  0xfa   : > { %557 = vst.msk [vmem:[#allocation2 + $0xc8] sm:$0xff] %vm531_vm1, %v486_v25  ;;  %556 = vst.msk [vmem:[#allocation2 + $0xc0] sm:$0xff] %vm531_vm1, %v484_v26 }
  0xfb   : > { %590 = vst.msk [vmem:[#allocation2 + $0xc8] sm:$0xff] %vm564_vm2, %v2532_v2  ;;  %589 = vst.msk [vmem:[#allocation2 + $0xc0] sm:$0xff] %vm564_vm2, %v2532_v2 }
  0xfd   : > { %v490_v27 = vpop.permute.xlu1 %489  ;;  %v488_v28 = vpop.permute.xlu0 %487 }
  0xfe   : > { %559 = vst.msk [vmem:[#allocation2 + $0xd8] sm:$0xff] %vm531_vm1, %v490_v27  ;;  %558 = vst.msk [vmem:[#allocation2 + $0xd0] sm:$0xff] %vm531_vm1, %v488_v28 }
  0xff   : > { %592 = vst.msk [vmem:[#allocation2 + $0xd8] sm:$0xff] %vm564_vm2, %v2532_v2  ;;  %591 = vst.msk [vmem:[#allocation2 + $0xd0] sm:$0xff] %vm564_vm2, %v2532_v2 }
 0x101   : > { %v494_v29 = vpop.permute.xlu1 %493  ;;  %v492_v30 = vpop.permute.xlu0 %491 }
 0x102   : > { %561 = vst.msk [vmem:[#allocation2 + $0xe8] sm:$0xff] %vm531_vm1, %v494_v29  ;;  %560 = vst.msk [vmem:[#allocation2 + $0xe0] sm:$0xff] %vm531_vm1, %v492_v30 }
 0x103   : > { %594 = vst.msk [vmem:[#allocation2 + $0xe8] sm:$0xff] %vm564_vm2, %v2532_v2  ;;  %593 = vst.msk [vmem:[#allocation2 + $0xe0] sm:$0xff] %vm564_vm2, %v2532_v2 }
 0x105   : > { %v498_v31 = vpop.permute.xlu1 %497  ;;  %v496_v32 = vpop.permute.xlu0 %495 }
 0x106   : > { %563 = vst.msk [vmem:[#allocation2 + $0xf8] sm:$0xff] %vm531_vm1, %v498_v31  ;;  %562 = vst.msk [vmem:[#allocation2 + $0xf0] sm:$0xff] %vm531_vm1, %v496_v32 }
 0x107   : > { %596 = vst.msk [vmem:[#allocation2 + $0xf8] sm:$0xff] %vm564_vm2, %v2532_v2  ;;  %595 = vst.msk [vmem:[#allocation2 + $0xf0] sm:$0xff] %vm564_vm2, %v2532_v2 }
 0x108 PF: > { %p597_p4 = scmp.gt.s32.totalorder %s2513_s22, 0 }
 0x10a   : > { %p598_p6 = pnand %p597_p4, %p301_p5 }
 0x10b   : > { %v602_v33 = vld [vmem:[#allocation3] sm:$0xff] (!%p598_p6)  ;;  %vm634_vm3 = vcmask (!%p598_p6), 523264   ;;  %v603_v34 = vld [vmem:[#allocation3 + $0x8] sm:$0xff] (!%p598_p6)  ;;  %v604_v35 = vld [vmem:[#allocation3 + $0x10] sm:$0xff] (!%p598_p6) }
 0x10c   : > { %601 = sbr.rel (%p598_p6) target bundleno = 284 (0x11c), region = 56  ;;  %635 = vst.msk [vmem:[#allocation2] sm:$0xff] (!%p598_p6), %vm634_vm3, %v602_v33  ;;  %636 = vst.msk [vmem:[#allocation2 + $0x8] sm:$0xff] (!%p598_p6), %vm634_vm3, %v603_v34  ;;  %v605_v36 = vld [vmem:[#allocation3 + $0x18] sm:$0xff] (!%p598_p6)  ;;  %v606_v37 = vld [vmem:[#allocation3 + $0x20] sm:$0xff] (!%p598_p6) }
 0x10d   : > { %637 = vst.msk [vmem:[#allocation2 + $0x10] sm:$0xff] (!%p598_p6), %vm634_vm3, %v604_v35  ;;  %v607_v38 = vld [vmem:[#allocation3 + $0x28] sm:$0xff] (!%p598_p6)  ;;  %638 = vst.msk [vmem:[#allocation2 + $0x18] sm:$0xff] (!%p598_p6), %vm634_vm3, %v605_v36  ;;  %v608_v39 = vld [vmem:[#allocation3 + $0x30] sm:$0xff] (!%p598_p6) }
 0x10e   : > { %639 = vst.msk [vmem:[#allocation2 + $0x20] sm:$0xff] (!%p598_p6), %vm634_vm3, %v606_v37  ;;  %640 = vst.msk [vmem:[#allocation2 + $0x28] sm:$0xff] (!%p598_p6), %vm634_vm3, %v607_v38  ;;  %v609_v40 = vld [vmem:[#allocation3 + $0x38] sm:$0xff] (!%p598_p6)  ;;  %v610_v41 = vld [vmem:[#allocation3 + $0x40] sm:$0xff] (!%p598_p6) }
 0x10f   : > { %641 = vst.msk [vmem:[#allocation2 + $0x30] sm:$0xff] (!%p598_p6), %vm634_vm3, %v608_v39  ;;  %642 = vst.msk [vmem:[#allocation2 + $0x38] sm:$0xff] (!%p598_p6), %vm634_vm3, %v609_v40  ;;  %v611_v42 = vld [vmem:[#allocation3 + $0x48] sm:$0xff] (!%p598_p6)  ;;  %v612_v43 = vld [vmem:[#allocation3 + $0x50] sm:$0xff] (!%p598_p6) }
 0x110   : > { %643 = vst.msk [vmem:[#allocation2 + $0x40] sm:$0xff] (!%p598_p6), %vm634_vm3, %v610_v41  ;;  %v613_v44 = vld [vmem:[#allocation3 + $0x58] sm:$0xff] (!%p598_p6)  ;;  %644 = vst.msk [vmem:[#allocation2 + $0x48] sm:$0xff] (!%p598_p6), %vm634_vm3, %v611_v42  ;;  %v614_v45 = vld [vmem:[#allocation3 + $0x60] sm:$0xff] (!%p598_p6) }
 0x111   : > { %645 = vst.msk [vmem:[#allocation2 + $0x50] sm:$0xff] (!%p598_p6), %vm634_vm3, %v612_v43  ;;  %646 = vst.msk [vmem:[#allocation2 + $0x58] sm:$0xff] (!%p598_p6), %vm634_vm3, %v613_v44  ;;  %v615_v46 = vld [vmem:[#allocation3 + $0x68] sm:$0xff] (!%p598_p6)  ;;  %v616_v47 = vld [vmem:[#allocation3 + $0x70] sm:$0xff] (!%p598_p6) }
 0x112   : > { %647 = vst.msk [vmem:[#allocation2 + $0x60] sm:$0xff] (!%p598_p6), %vm634_vm3, %v614_v45  ;;  %648 = vst.msk [vmem:[#allocation2 + $0x68] sm:$0xff] (!%p598_p6), %vm634_vm3, %v615_v46  ;;  %v617_v48 = vld [vmem:[#allocation3 + $0x78] sm:$0xff] (!%p598_p6)  ;;  %v618_v49 = vld [vmem:[#allocation3 + $0x80] sm:$0xff] (!%p598_p6) }
 0x113   : > { %649 = vst.msk [vmem:[#allocation2 + $0x70] sm:$0xff] %vm634_vm3, %v616_v47  ;;  %v619_v50 = vld [vmem:[#allocation3 + $0x88] sm:$0xff]  ;;  %650 = vst.msk [vmem:[#allocation2 + $0x78] sm:$0xff] %vm634_vm3, %v617_v48  ;;  %v620_v51 = vld [vmem:[#allocation3 + $0x90] sm:$0xff] }
 0x114   : > { %651 = vst.msk [vmem:[#allocation2 + $0x80] sm:$0xff] %vm634_vm3, %v618_v49  ;;  %652 = vst.msk [vmem:[#allocation2 + $0x88] sm:$0xff] %vm634_vm3, %v619_v50  ;;  %v621_v52 = vld [vmem:[#allocation3 + $0x98] sm:$0xff]  ;;  %v622_v53 = vld [vmem:[#allocation3 + $0xa0] sm:$0xff] }
 0x115   : > { %653 = vst.msk [vmem:[#allocation2 + $0x90] sm:$0xff] %vm634_vm3, %v620_v51  ;;  %654 = vst.msk [vmem:[#allocation2 + $0x98] sm:$0xff] %vm634_vm3, %v621_v52  ;;  %v623_v54 = vld [vmem:[#allocation3 + $0xa8] sm:$0xff]  ;;  %v624_v55 = vld [vmem:[#allocation3 + $0xb0] sm:$0xff] }
 0x116   : > { %655 = vst.msk [vmem:[#allocation2 + $0xa0] sm:$0xff] %vm634_vm3, %v622_v53  ;;  %v625_v56 = vld [vmem:[#allocation3 + $0xb8] sm:$0xff]  ;;  %656 = vst.msk [vmem:[#allocation2 + $0xa8] sm:$0xff] %vm634_vm3, %v623_v54  ;;  %v626_v57 = vld [vmem:[#allocation3 + $0xc0] sm:$0xff] }
 0x117   : > { %657 = vst.msk [vmem:[#allocation2 + $0xb0] sm:$0xff] %vm634_vm3, %v624_v55  ;;  %658 = vst.msk [vmem:[#allocation2 + $0xb8] sm:$0xff] %vm634_vm3, %v625_v56  ;;  %v627_v58 = vld [vmem:[#allocation3 + $0xc8] sm:$0xff]  ;;  %v628_v59 = vld [vmem:[#allocation3 + $0xd0] sm:$0xff] }
 0x118   : > { %659 = vst.msk [vmem:[#allocation2 + $0xc0] sm:$0xff] %vm634_vm3, %v626_v57  ;;  %660 = vst.msk [vmem:[#allocation2 + $0xc8] sm:$0xff] %vm634_vm3, %v627_v58  ;;  %v629_v60 = vld [vmem:[#allocation3 + $0xd8] sm:$0xff]  ;;  %v630_v61 = vld [vmem:[#allocation3 + $0xe0] sm:$0xff] }
 0x119   : > { %661 = vst.msk [vmem:[#allocation2 + $0xd0] sm:$0xff] %vm634_vm3, %v628_v59  ;;  %v631_v62 = vld [vmem:[#allocation3 + $0xe8] sm:$0xff]  ;;  %662 = vst.msk [vmem:[#allocation2 + $0xd8] sm:$0xff] %vm634_vm3, %v629_v60  ;;  %v632_v63 = vld [vmem:[#allocation3 + $0xf0] sm:$0xff] }
 0x11a   : > { %663 = vst.msk [vmem:[#allocation2 + $0xe0] sm:$0xff] %vm634_vm3, %v630_v61  ;;  %664 = vst.msk [vmem:[#allocation2 + $0xe8] sm:$0xff] %vm634_vm3, %v631_v62  ;;  %v633_v0 = vld [vmem:[#allocation3 + $0xf8] sm:$0xff] }
 0x11b   : > { %665 = vst.msk [vmem:[#allocation2 + $0xf0] sm:$0xff] %vm634_vm3, %v632_v63  ;;  %666 = vst.msk [vmem:[#allocation2 + $0xf8] sm:$0xff] %vm634_vm3, %v633_v0 }
 0x11c PF: > { %p2087_p8 = scmp.ne.s32.totalorder %s2513_s22, 0 }
 0x11d   : > { %s670_s21 = smul.u32 (!%p2087_p8), 5, %s2513_s22  ;;  %vm708_vm4 = vcmask (!%p2087_p8), 130048   ;;  %s3119_s17 = scalar_lea.vmem (!%p2087_p8), %s4085_s3, %s2708_s8  ;;  %v2533_v1 = vmov (!%p2087_p8), 0.0  }
 0x11e   : > { %669 = sbr.rel (%p2087_p8) target bundleno = 305 (0x131), region = 60  ;;  %s725_s18 = scalar_lea.vmem (!%p2087_p8), [#allocation5], %s2708_s8  ;;  %v674_v2 = vld [vmem:[%s3119_s17] sm:$0xff] (!%p2087_p8)  ;;  %v675_v3 = vld [vmem:[%s3119_s17 + $0x8] sm:$0xff] (!%p2087_p8)  ;;  %v676_v4 = vld [vmem:[%s3119_s17 + $0x10] sm:$0xff] (!%p2087_p8) }
 0x11f   : > { %s671_s28 = sadd.s32 (!%p2087_p8), 2, %s670_s21  ;;  %726 = vst.msk [vmem:[%s725_s18] sm:$0xff] (!%p2087_p8), %vm708_vm4, %v2533_v1  ;;  %727 = vst.msk [vmem:[%s725_s18 + $0x8] sm:$0xff] (!%p2087_p8), %vm708_vm4, %v2533_v1  ;;  %v677_v5 = vld [vmem:[%s3119_s17 + $0x18] sm:$0xff] (!%p2087_p8)  ;;  %v678_v6 = vld [vmem:[%s3119_s17 + $0x20] sm:$0xff] (!%p2087_p8)  ;;  %s707_s14 = scalar_lea.vmem (!%p2087_p8), [#allocation4], %s2708_s8 }
 0x120   : > { %728 = vst.msk [vmem:[%s725_s18 + $0x10] sm:$0xff] (!%p2087_p8), %vm708_vm4, %v2533_v1  ;;  %729 = vst.msk [vmem:[%s725_s18 + $0x18] sm:$0xff] (!%p2087_p8), %vm708_vm4, %v2533_v1  ;;  %s672_s6 = sld [smem:[#allocation6 + %s671_s28]] (!%p2087_p8)  ;;  %v679_v7 = vld [vmem:[%s3119_s17 + $0x28] sm:$0xff] (!%p2087_p8)  ;;  %v680_v8 = vld [vmem:[%s3119_s17 + $0x30] sm:$0xff] (!%p2087_p8) }
 0x121   : > { %730 = vst.msk [vmem:[%s725_s18 + $0x20] sm:$0xff] (!%p2087_p8), %vm708_vm4, %v2533_v1  ;;  %731 = vst.msk [vmem:[%s725_s18 + $0x28] sm:$0xff] (!%p2087_p8), %vm708_vm4, %v2533_v1  ;;  %v681_v9 = vld [vmem:[%s3119_s17 + $0x38] sm:$0xff] (!%p2087_p8)  ;;  %v682_v10 = vld [vmem:[%s3119_s17 + $0x40] sm:$0xff] (!%p2087_p8) }
 0x122   : > { %732 = vst.msk [vmem:[%s725_s18 + $0x30] sm:$0xff] (!%p2087_p8), %vm708_vm4, %v2533_v1  ;;  %733 = vst.msk [vmem:[%s725_s18 + $0x38] sm:$0xff] (!%p2087_p8), %vm708_vm4, %v2533_v1  ;;  %v683_v11 = vld [vmem:[%s3119_s17 + $0x48] sm:$0xff] (!%p2087_p8)  ;;  %v684_v13 = vld [vmem:[%s3119_s17 + $0x50] sm:$0xff] (!%p2087_p8) }
 0x123   : > { %734 = vst.msk [vmem:[%s725_s18 + $0x40] sm:$0xff] (!%p2087_p8), %vm708_vm4, %v2533_v1  ;;  %735 = vst.msk [vmem:[%s725_s18 + $0x48] sm:$0xff] (!%p2087_p8), %vm708_vm4, %v2533_v1  ;;  %v685_v14 = vld [vmem:[%s3119_s17 + $0x58] sm:$0xff] (!%p2087_p8)  ;;  %v686_v15 = vld [vmem:[%s3119_s17 + $0x60] sm:$0xff] (!%p2087_p8) }
 0x124   : > { %736 = vst.msk [vmem:[%s725_s18 + $0x50] sm:$0xff] (!%p2087_p8), %vm708_vm4, %v2533_v1  ;;  %737 = vst.msk [vmem:[%s725_s18 + $0x58] sm:$0xff] (!%p2087_p8), %vm708_vm4, %v2533_v1  ;;  %v687_v20 = vld [vmem:[%s3119_s17 + $0x68] sm:$0xff] (!%p2087_p8)  ;;  %v688_v21 = vld [vmem:[%s3119_s17 + $0x70] sm:$0xff] (!%p2087_p8) }
 0x125   : > { %738 = vst.msk [vmem:[%s725_s18 + $0x60] sm:$0xff] %vm708_vm4, %v2533_v1  ;;  %739 = vst.msk [vmem:[%s725_s18 + $0x68] sm:$0xff] %vm708_vm4, %v2533_v1  ;;  %v689_v22 = vld [vmem:[%s3119_s17 + $0x78] sm:$0xff] }
 0x126   : > { %740 = vst.msk [vmem:[%s725_s18 + $0x70] sm:$0xff] %vm708_vm4, %v2533_v1  ;;  %741 = vst.msk [vmem:[%s725_s18 + $0x78] sm:$0xff] %vm708_vm4, %v2533_v1  ;;  %v690_v12 = vstv %s672_s6 }
 0x127   : > { %v691_v16 = vmul.f32 %v690_v12, %v674_v2  ;;  %v692_v17 = vmul.f32 %v690_v12, %v675_v3  ;;  %v693_v18 = vmul.f32 %v690_v12, %v676_v4  ;;  %v694_v19 = vmul.f32 %v690_v12, %v677_v5 }
 0x128   : > { %v695_v23 = vmul.f32 %v690_v12, %v678_v6  ;;  %v696_v24 = vmul.f32 %v690_v12, %v679_v7  ;;  %v697_v25 = vmul.f32 %v690_v12, %v680_v8  ;;  %v698_v26 = vmul.f32 %v690_v12, %v681_v9 }
 0x129   : > { %709 = vst.msk [vmem:[%s707_s14] sm:$0xff] %vm708_vm4, %v691_v16  ;;  %710 = vst.msk [vmem:[%s707_s14 + $0x8] sm:$0xff] %vm708_vm4, %v692_v17  ;;  %v699_v27 = vmul.f32 %v690_v12, %v682_v10  ;;  %v700_v28 = vmul.f32 %v690_v12, %v683_v11  ;;  %v701_v29 = vmul.f32 %v690_v12, %v684_v13 }
 0x12a   : > { %711 = vst.msk [vmem:[%s707_s14 + $0x10] sm:$0xff] %vm708_vm4, %v693_v18  ;;  %712 = vst.msk [vmem:[%s707_s14 + $0x18] sm:$0xff] %vm708_vm4, %v694_v19  ;;  %v702_v30 = vmul.f32 %v690_v12, %v685_v14  ;;  %v703_v31 = vmul.f32 %v690_v12, %v686_v15  ;;  %v704_v32 = vmul.f32 %v690_v12, %v687_v20 }
 0x12b   : > { %713 = vst.msk [vmem:[%s707_s14 + $0x20] sm:$0xff] %vm708_vm4, %v695_v23  ;;  %714 = vst.msk [vmem:[%s707_s14 + $0x28] sm:$0xff] %vm708_vm4, %v696_v24  ;;  %v705_v33 = vmul.f32 %v690_v12, %v688_v21  ;;  %v706_v34 = vmul.f32 %v690_v12, %v689_v22 }
 0x12c   : > { %715 = vst.msk [vmem:[%s707_s14 + $0x30] sm:$0xff] %vm708_vm4, %v697_v25  ;;  %716 = vst.msk [vmem:[%s707_s14 + $0x38] sm:$0xff] %vm708_vm4, %v698_v26 }
 0x12d   : > { %717 = vst.msk [vmem:[%s707_s14 + $0x40] sm:$0xff] %vm708_vm4, %v699_v27  ;;  %718 = vst.msk [vmem:[%s707_s14 + $0x48] sm:$0xff] %vm708_vm4, %v700_v28 }
 0x12e   : > { %719 = vst.msk [vmem:[%s707_s14 + $0x50] sm:$0xff] %vm708_vm4, %v701_v29  ;;  %720 = vst.msk [vmem:[%s707_s14 + $0x58] sm:$0xff] %vm708_vm4, %v702_v30 }
 0x12f   : > { %721 = vst.msk [vmem:[%s707_s14 + $0x60] sm:$0xff] %vm708_vm4, %v703_v31  ;;  %722 = vst.msk [vmem:[%s707_s14 + $0x68] sm:$0xff] %vm708_vm4, %v704_v32 }
 0x130   : > { %723 = vst.msk [vmem:[%s707_s14 + $0x70] sm:$0xff] %vm708_vm4, %v705_v33  ;;  %724 = vst.msk [vmem:[%s707_s14 + $0x78] sm:$0xff] %vm708_vm4, %v706_v34 }
 0x131 PF: > { %v758_v35 = vld [vmem:[#allocation2 + $0x80] sm:$0xff]  ;;  %v759_v36 = vld [vmem:[#allocation2 + $0x88] sm:$0xff]  ;;  %v760_v40 = vld [vmem:[#allocation2 + $0x90] sm:$0xff]  ;;  %s2535_s28 = smov 80   ;;  %s2536_s27 = smov 112   ;;  %vm1494_vm5 = vcmask 130048  }
 0x132   : > { %v742_v37 = vld [vmem:[#allocation2] sm:$0xff]  ;;  %v2253_v38 = vpack.c.bf16 %v759_v36, %v758_v35  ;;  %v743_v39 = vld [vmem:[#allocation2 + $0x8] sm:$0xff]  ;;  %v761_v41 = vld [vmem:[#allocation2 + $0x98] sm:$0xff]  ;;  %s3475_s18 = scalar_lea.vmem [#allocation4], %s2708_s8  ;;  %s3485_s6 = scalar_lea.vmem [#allocation5], %s2708_s8  ;;  %vm1806_vm8 = vcmask 261120  }
 0x133   : > { %v2255_v42 = vpack.c.bf16 %v743_v39, %v742_v37  ;;  %v2257_v43 = vpack.c.bf16 %v761_v41, %v760_v40  ;;  %v744_v44 = vld [vmem:[#allocation2 + $0x10] sm:$0xff]  ;;  %v745_v45 = vld [vmem:[#allocation2 + $0x18] sm:$0xff]  ;;  %v762_v46 = vld [vmem:[#allocation2 + $0xa0] sm:$0xff]  ;;  %s1527_s14 = scalar_select %p300_p12, 1, 0  ;;  %vm1823_vm9 = vcmask 392192  }
 0x134   : > { %2254 = vmatprep.subr.bf16.mxu0 %v2253_v38  ;;  %v763_v47 = vld [vmem:[#allocation2 + $0xa8] sm:$0xff]  ;;  %2286 = vmatprep.subr.bf16.mxu1 %v2253_v38  ;;  %v2259_v48 = vpack.c.bf16 %v745_v45, %v744_v44  ;;  %v746_v50 = vld [vmem:[#allocation2 + $0x20] sm:$0xff]  ;;  %v764_v52 = vld [vmem:[#allocation2 + $0xb0] sm:$0xff]  ;;  %p1610_p9 = scmp.eq.s32.totalorder %s2513_s22, 1  ;;  %vm1841_vm10 = vcmask 523264  }
 0x135   : > { %2256 = vmatpush3.bf16.msra.mxu0 %v2255_v42  ;;  %2288 = vmatpush3.bf16.msra.mxu1 %v2255_v42  ;;  %v2261_v49 = vpack.c.bf16 %v763_v47, %v762_v46  ;;  %v747_v51 = vld [vmem:[#allocation2 + $0x28] sm:$0xff]  ;;  %v765_v53 = vld [vmem:[#allocation2 + $0xb8] sm:$0xff]  ;;  %v748_v56 = vld [vmem:[#allocation2 + $0x30] sm:$0xff] }
 0x136   : > { %2258 = vmatprep.subr.bf16.mxu0 %v2257_v43  ;;  %2290 = vmatprep.subr.bf16.mxu1 %v2257_v43  ;;  %v2263_v54 = vpack.c.bf16 %v747_v51, %v746_v50  ;;  %v2265_v55 = vpack.c.bf16 %v765_v53, %v764_v52  ;;  %v749_v57 = vld [vmem:[#allocation2 + $0x38] sm:$0xff]  ;;  %v766_v58 = vld [vmem:[#allocation2 + $0xc0] sm:$0xff]  ;;  %v767_v59 = vld [vmem:[#allocation2 + $0xc8] sm:$0xff] }
 0x137   : > { %v775_v60 = vld [vmem:[%s2719_s11 + $0x8] sm:$0xff]  ;;  %v2267_v61 = vpack.c.bf16 %v749_v57, %v748_v56  ;;  %v2269_v62 = vpack.c.bf16 %v767_v59, %v766_v58  ;;  %v750_v63 = vld [vmem:[#allocation2 + $0x40] sm:$0xff]  ;;  %v768_v1 = vld [vmem:[#allocation2 + $0xd0] sm:$0xff] }
 0x138   : > { %870 = vmatprep.mubr.f32.mxu0 %v775_v60  ;;  %v751_v0 = vld [vmem:[#allocation2 + $0x48] sm:$0xff]  ;;  %v769_v2 = vld [vmem:[#allocation2 + $0xd8] sm:$0xff]  ;;  %v752_v5 = vld [vmem:[#allocation2 + $0x50] sm:$0xff] }
 0x139   : > { %2260 = vmatpush3.bf16.msra.mxu0 %v2259_v48  ;;  %2292 = vmatpush3.bf16.msra.mxu1 %v2259_v48  ;;  %v2271_v3 = vpack.c.bf16 %v751_v0, %v750_v63  ;;  %v2273_v4 = vpack.c.bf16 %v769_v2, %v768_v1  ;;  %v753_v6 = vld [vmem:[#allocation2 + $0x58] sm:$0xff]  ;;  %v770_v7 = vld [vmem:[#allocation2 + $0xe0] sm:$0xff]  ;;  %v771_v8 = vld [vmem:[#allocation2 + $0xe8] sm:$0xff] }
 0x13a   : > { %2262 = vmatprep.subr.bf16.mxu0 %v2261_v49  ;;  %2294 = vmatprep.subr.bf16.mxu1 %v2261_v49  ;;  %v952_v9 = vld [vmem:[%s2700_s7 + $0x8] sm:$0xff]  ;;  %v2275_v10 = vpack.c.bf16 %v753_v6, %v752_v5  ;;  %v2277_v11 = vpack.c.bf16 %v771_v8, %v770_v7  ;;  %v754_v12 = vld [vmem:[#allocation2 + $0x60] sm:$0xff]  ;;  %v772_v14 = vld [vmem:[#allocation2 + $0xf0] sm:$0xff] }
 0x13b   : > { %1047 = vmatprep.mubr.f32.mxu1 %v952_v9  ;;  %v755_v13 = vld [vmem:[#allocation2 + $0x68] sm:$0xff]  ;;  %v773_v15 = vld [vmem:[#allocation2 + $0xf8] sm:$0xff]  ;;  %v756_v18 = vld [vmem:[#allocation2 + $0x70] sm:$0xff] }
 0x13c   : > { %v2279_v16 = vpack.c.bf16 %v755_v13, %v754_v12  ;;  %v2281_v17 = vpack.c.bf16 %v773_v15, %v772_v14  ;;  %v757_v19 = vld [vmem:[#allocation2 + $0x78] sm:$0xff]  ;;  %v774_v21 = vld [vmem:[%s2719_s11] sm:$0xff]  ;;  %v776_v25 = vld [vmem:[%s2719_s11 + $0x10] sm:$0xff] }
 0x13d   : > { %2264 = vmatpush3.bf16.msra.mxu0 %v2263_v54  ;;  %2296 = vmatpush3.bf16.msra.mxu1 %v2263_v54  ;;  %v2283_v20 = vpack.c.bf16 %v757_v19, %v756_v18  ;;  %v951_v22 = vld [vmem:[%s2700_s7] sm:$0xff]  ;;  %v777_v23 = vld [vmem:[%s2719_s11 + $0x18] sm:$0xff]  ;;  %v953_v26 = vld [vmem:[%s2700_s7 + $0x10] sm:$0xff] }
 0x13e   : > { %2266 = vmatprep.subr.bf16.mxu0 %v2265_v55  ;;  %2298 = vmatprep.subr.bf16.mxu1 %v2265_v55  ;;  %v954_v24 = vld [vmem:[%s2700_s7 + $0x18] sm:$0xff]  ;;  %v779_v27 = vld [vmem:[%s2719_s11 + $0x28] sm:$0xff]  ;;  %v778_v29 = vld [vmem:[%s2719_s11 + $0x20] sm:$0xff] }
 0x13f   : > { %v956_v28 = vld [vmem:[%s2700_s7 + $0x28] sm:$0xff]  ;;  %v955_v30 = vld [vmem:[%s2700_s7 + $0x20] sm:$0xff]  ;;  %v781_v31 = vld [vmem:[%s2719_s11 + $0x38] sm:$0xff] }
 0x140   : > { %v958_v32 = vld [vmem:[%s2700_s7 + $0x38] sm:$0xff]  ;;  %v780_v33 = vld [vmem:[%s2719_s11 + $0x30] sm:$0xff]  ;;  %v783_v35 = vld [vmem:[%s2719_s11 + $0x48] sm:$0xff] }
 0x141   : > { %2268 = vmatpush3.bf16.msra.mxu0 %v2267_v61  ;;  %2300 = vmatpush3.bf16.msra.mxu1 %v2267_v61  ;;  %v957_v34 = vld [vmem:[%s2700_s7 + $0x30] sm:$0xff]  ;;  %v960_v36 = vld [vmem:[%s2700_s7 + $0x48] sm:$0xff]  ;;  %v782_v37 = vld [vmem:[%s2719_s11 + $0x40] sm:$0xff] }
 0x142   : > { %2270 = vmatprep.subr.bf16.mxu0 %v2269_v62  ;;  %2302 = vmatprep.subr.bf16.mxu1 %v2269_v62  ;;  %v959_v38 = vld [vmem:[%s2700_s7 + $0x40] sm:$0xff]  ;;  %v785_v39 = vld [vmem:[%s2719_s11 + $0x58] sm:$0xff]  ;;  %v784_v41 = vld [vmem:[%s2719_s11 + $0x50] sm:$0xff] }
 0x143   : > { %v962_v40 = vld [vmem:[%s2700_s7 + $0x58] sm:$0xff]  ;;  %v961_v42 = vld [vmem:[%s2700_s7 + $0x50] sm:$0xff]  ;;  %v787_v43 = vld [vmem:[%s2719_s11 + $0x68] sm:$0xff] }
 0x144   : > { %v964_v44 = vld [vmem:[%s2700_s7 + $0x68] sm:$0xff]  ;;  %v786_v45 = vld [vmem:[%s2719_s11 + $0x60] sm:$0xff]  ;;  %v789_v47 = vld [vmem:[%s2719_s11 + $0x78] sm:$0xff] }
 0x145   : > { %2272 = vmatpush3.bf16.msra.mxu0 %v2271_v3  ;;  %2304 = vmatpush3.bf16.msra.mxu1 %v2271_v3  ;;  %v963_v46 = vld [vmem:[%s2700_s7 + $0x60] sm:$0xff]  ;;  %v966_v48 = vld [vmem:[%s2700_s7 + $0x78] sm:$0xff]  ;;  %v788_v49 = vld [vmem:[%s2719_s11 + $0x70] sm:$0xff] }
 0x146   : > { %2274 = vmatprep.subr.bf16.mxu0 %v2273_v4  ;;  %2306 = vmatprep.subr.bf16.mxu1 %v2273_v4  ;;  %v965_v50 = vld [vmem:[%s2700_s7 + $0x70] sm:$0xff]  ;;  %v791_v51 = vld [vmem:[%s2719_s11 + $0x88] sm:$0xff]  ;;  %v790_v53 = vld [vmem:[%s2719_s11 + $0x80] sm:$0xff] }
 0x147   : > { %v968_v52 = vld [vmem:[%s2700_s7 + $0x88] sm:$0xff]  ;;  %v967_v54 = vld [vmem:[%s2700_s7 + $0x80] sm:$0xff]  ;;  %v793_v55 = vld [vmem:[%s2719_s11 + $0x98] sm:$0xff] }
 0x148   : > { %v970_v56 = vld [vmem:[%s2700_s7 + $0x98] sm:$0xff]  ;;  %v792_v57 = vld [vmem:[%s2719_s11 + $0x90] sm:$0xff]  ;;  %v795_v59 = vld [vmem:[%s2719_s11 + $0xa8] sm:$0xff] }
 0x149   : > { %2276 = vmatpush3.bf16.msra.mxu0 %v2275_v10  ;;  %2308 = vmatpush3.bf16.msra.mxu1 %v2275_v10  ;;  %v969_v58 = vld [vmem:[%s2700_s7 + $0x90] sm:$0xff]  ;;  %v794_v60 = vld [vmem:[%s2719_s11 + $0xa0] sm:$0xff]  ;;  %v797_v61 = vld [vmem:[%s2719_s11 + $0xb8] sm:$0xff] }
 0x14a   : > { %2278 = vmatprep.subr.bf16.mxu0 %v2277_v11  ;;  %2310 = vmatprep.subr.bf16.mxu1 %v2277_v11  ;;  %v796_v62 = vld [vmem:[%s2719_s11 + $0xb0] sm:$0xff]  ;;  %v799_v63 = vld [vmem:[%s2719_s11 + $0xc8] sm:$0xff]  ;;  %v798_v0 = vld [vmem:[%s2719_s11 + $0xc0] sm:$0xff] }
 0x14b   : > { %v801_v1 = vld [vmem:[%s2719_s11 + $0xd8] sm:$0xff]  ;;  %v800_v2 = vld [vmem:[%s2719_s11 + $0xd0] sm:$0xff]  ;;  %v803_v3 = vld [vmem:[%s2719_s11 + $0xe8] sm:$0xff] }
 0x14c   : > { %v802_v4 = vld [vmem:[%s2719_s11 + $0xe0] sm:$0xff]  ;;  %v805_v5 = vld [vmem:[%s2719_s11 + $0xf8] sm:$0xff]  ;;  %v804_v6 = vld [vmem:[%s2719_s11 + $0xf0] sm:$0xff]  ;;  %s3236_s11 = smul.u32 5, %s2513_s22 }
 0x14d   : > { %2280 = vmatpush3.bf16.msra.mxu0 %v2279_v16  ;;  %2312 = vmatpush3.bf16.msra.mxu1 %v2279_v16  ;;  %v972_v7 = vld [vmem:[%s2700_s7 + $0xa8] sm:$0xff]  ;;  %v971_v8 = vld [vmem:[%s2700_s7 + $0xa0] sm:$0xff]  ;;  %v974_v9 = vld [vmem:[%s2700_s7 + $0xb8] sm:$0xff]  ;;  %s1611_s22 = scalar_select %p1610_p9, 1, 0 }
 0x14e   : > { %2282 = vmatprep.subr.bf16.mxu0 %v2281_v17  ;;  %2314 = vmatprep.subr.bf16.mxu1 %v2281_v17  ;;  %v973_v10 = vld [vmem:[%s2700_s7 + $0xb0] sm:$0xff]  ;;  %v976_v11 = vld [vmem:[%s2700_s7 + $0xc8] sm:$0xff]  ;;  %v975_v12 = vld [vmem:[%s2700_s7 + $0xc0] sm:$0xff]  ;;  %s1146_s9 = sld [smem:[#allocation6 + %s3236_s11]]  ;;  %s1296_s26 = sadd.s32 3, %s3236_s11 }
 0x14f   : > { %v978_v13 = vld [vmem:[%s2700_s7 + $0xd8] sm:$0xff]  ;;  %v977_v14 = vld [vmem:[%s2700_s7 + $0xd0] sm:$0xff]  ;;  %v980_v15 = vld [vmem:[%s2700_s7 + $0xe8] sm:$0xff]  ;;  %s1297_s29 = sld [smem:[#allocation6 + %s1296_s26]]  ;;  %s1395_s10 = sadd.s32 4, %s3236_s11 }
 0x150   : > { %v979_v16 = vld [vmem:[%s2700_s7 + $0xe0] sm:$0xff]  ;;  %v982_v17 = vld [vmem:[%s2700_s7 + $0xf8] sm:$0xff]  ;;  %v981_v18 = vld [vmem:[%s2700_s7 + $0xf0] sm:$0xff]  ;;  %s2534_s7 = smov 96   ;;  %s1396_s21 = sld [smem:[#allocation6 + %s1395_s10]] }
 0x151   : > { %2284 = vmatpush3.bf16.msra.mxu0 %v2283_v20  ;;  %2316 = vmatpush3.bf16.msra.mxu1 %v2283_v20  ;;  %s1261_s16 = sadd.s32 1, %s3236_s11  ;;  %s2537_s11 = smov 32  }
 0x152   : > { %s1262_s17 = sld [smem:[#allocation6 + %s1261_s16]]  ;;  %s2539_s26 = smov 16  }
 0x154   : > { %871 = vmatmul.mubr.f32.vlgmr.msra.gmra.mrb[0].mxu0 %v774_v21  ;;  %1048 = vmatmul.mubr.f32.vlgmr.msra.gmra.mrb[0].mxu1 %v951_v22 }
 0x155   : > { %875 = vmatprep.mubr.f32.mxu0 %v777_v23  ;;  %1052 = vmatprep.mubr.f32.mxu1 %v954_v24 }
 0x158   : > { %876 = vmatmul.mubr.f32.gmra.mrb[2].mxu0 %v776_v25  ;;  %1053 = vmatmul.mubr.f32.gmra.mrb[2].mxu1 %v953_v26 }
 0x159   : > { %880 = vmatprep.mubr.f32.mxu0 %v779_v27  ;;  %1057 = vmatprep.mubr.f32.mxu1 %v956_v28 }
 0x15c   : > { %881 = vmatmul.mubr.f32.gmra.mrb[4].mxu0 %v778_v29  ;;  %1058 = vmatmul.mubr.f32.gmra.mrb[4].mxu1 %v955_v30 }
 0x15d   : > { %885 = vmatprep.mubr.f32.mxu0 %v781_v31  ;;  %1062 = vmatprep.mubr.f32.mxu1 %v958_v32  ;;  %v3251_v31 = vstv %s1146_s9  ;;  %s2538_s9 = smov 48  }
 0x160   : > { %886 = vmatmul.mubr.f32.gmra.mrb[6].mxu0 %v780_v33  ;;  %1063 = vmatmul.mubr.f32.gmra.mrb[6].mxu1 %v957_v34 }
 0x161   : > { %890 = vmatprep.mubr.f32.mxu0 %v783_v35  ;;  %1067 = vmatprep.mubr.f32.mxu1 %v960_v36 }
 0x164   : > { %891 = vmatmul.mubr.f32.gmra.mrb[8].mxu0 %v782_v37  ;;  %1068 = vmatmul.mubr.f32.gmra.mrb[8].mxu1 %v959_v38  ;;  %v3261_v38 = vstv %s1297_s29  ;;  %s3915_s29 = scalar_lea.vmem [#allocation3], %s2708_s8 }
 0x165   : > { %895 = vmatprep.mubr.f32.mxu0 %v785_v39  ;;  %1072 = vmatprep.mubr.f32.mxu1 %v962_v40 }
 0x168   : > { %896 = vmatmul.mubr.f32.gmra.mrb[10].mxu0 %v784_v41  ;;  %1073 = vmatmul.mubr.f32.gmra.mrb[10].mxu1 %v961_v42 }
 0x169   : > { %900 = vmatprep.mubr.f32.mxu0 %v787_v43  ;;  %1077 = vmatprep.mubr.f32.mxu1 %v964_v44 }
 0x16c   : > { %901 = vmatmul.mubr.f32.gmra.mrb[12].mxu0 %v786_v45  ;;  %1078 = vmatmul.mubr.f32.gmra.mrb[12].mxu1 %v963_v46 }
 0x16d   : > { %905 = vmatprep.mubr.f32.mxu0 %v789_v47  ;;  %1082 = vmatprep.mubr.f32.mxu1 %v966_v48  ;;  %v3276_v48 = vstv %s1396_s21 }
 0x170   : > { %906 = vmatmul.mubr.f32.gmra.mrb[14].mxu0 %v788_v49  ;;  %1083 = vmatmul.mubr.f32.gmra.mrb[14].mxu1 %v965_v50 }
 0x171   : > { %910 = vmatprep.mubr.f32.mxu0 %v791_v51  ;;  %1087 = vmatprep.mubr.f32.mxu1 %v968_v52 }
 0x174   : > { %911 = vmatmul.mubr.f32.gmra.mrb[16].mxu0 %v790_v53  ;;  %1088 = vmatmul.mubr.f32.gmra.mrb[16].mxu1 %v967_v54 }
 0x175   : > { %915 = vmatprep.mubr.f32.mxu0 %v793_v55  ;;  %1092 = vmatprep.mubr.f32.mxu1 %v970_v56 }
 0x178   : > { %916 = vmatmul.mubr.f32.gmra.mrb[18].mxu0 %v792_v57  ;;  %1093 = vmatmul.mubr.f32.gmra.mrb[18].mxu1 %v969_v58 }
 0x179   : > { %920 = vmatprep.mubr.f32.mxu0 %v795_v59  ;;  %1097 = vmatprep.mubr.f32.mxu1 %v972_v7 }
 0x17c   : > { %921 = vmatmul.mubr.f32.gmra.mrb[20].mxu0 %v794_v60  ;;  %1098 = vmatmul.mubr.f32.gmra.mrb[20].mxu1 %v971_v8 }
 0x17d   : > { %925 = vmatprep.mubr.f32.mxu0 %v797_v61  ;;  %1102 = vmatprep.mubr.f32.mxu1 %v974_v9 }
 0x180   : > { %926 = vmatmul.mubr.f32.gmra.mrb[22].mxu0 %v796_v62  ;;  %1103 = vmatmul.mubr.f32.gmra.mrb[22].mxu1 %v973_v10 }
 0x181   : > { %930 = vmatprep.mubr.f32.mxu0 %v799_v63  ;;  %1107 = vmatprep.mubr.f32.mxu1 %v976_v11 }
 0x184   : > { %931 = vmatmul.mubr.f32.gmra.mrb[24].mxu0 %v798_v0  ;;  %1108 = vmatmul.mubr.f32.gmra.mrb[24].mxu1 %v975_v12 }
 0x185   : > { %935 = vmatprep.mubr.f32.mxu0 %v801_v1  ;;  %1112 = vmatprep.mubr.f32.mxu1 %v978_v13 }
 0x188   : > { %936 = vmatmul.mubr.f32.gmra.mrb[26].mxu0 %v800_v2  ;;  %1113 = vmatmul.mubr.f32.gmra.mrb[26].mxu1 %v977_v14 }
 0x189   : > { %940 = vmatprep.mubr.f32.mxu0 %v803_v3  ;;  %1117 = vmatprep.mubr.f32.mxu1 %v980_v15 }
 0x18c   : > { %941 = vmatmul.mubr.f32.gmra.mrb[28].mxu0 %v802_v4  ;;  %1118 = vmatmul.mubr.f32.gmra.mrb[28].mxu1 %v979_v16 }
 0x18d   : > { %945 = vmatprep.mubr.f32.mxu0 %v805_v5  ;;  %1122 = vmatprep.mubr.f32.mxu1 %v982_v17 }
 0x190   : > { %946 = vmatmul.mubr.f32.gmra.mrb[30].mxu0 %v804_v6  ;;  %1123 = vmatmul.mubr.f32.gmra.mrb[30].mxu1 %v981_v18 }
 0x227   : > { %v2125_v19 = vpop.f32.mrb[0].mxu0  ;;  %v2205_v20 = vpop.f32.mrb[0].mxu1 }
 0x228   : > { %v2126_v21 = vpop.f32.mrb[1].mxu0  ;;  %v2206_v22 = vpop.f32.mrb[1].mxu1 }
 0x229   : > { %v3240_v23 = vadd.f32 %v2126_v21, %v2125_v19  ;;  %v3242_v24 = vadd.f32 %v2206_v22, %v2205_v20 }
 0x22b   : > { %v2128_v25 = vpop.f32.mrb[2].mxu0  ;;  %1546 = vrot.lane.b32.xlu0 %v3240_v23, %s2534_s7  ;;  %v2208_v26 = vpop.f32.mrb[2].mxu1  ;;  %v1148_v35 = vmul.f32 %v3240_v23, %v3251_v31  ;;  %v1299_v45 = vmul.f32 %v3240_v23, %v3261_v38  ;;  %v1398_v52 = vmul.f32 %v3240_v23, %v3276_v48 }
 0x22c   : > { %v2129_v27 = vpop.f32.mrb[3].mxu0  ;;  %v2209_v28 = vpop.f32.mrb[3].mxu1 }
 0x22d   : > { %v3247_v29 = vadd.f32 %v2129_v27, %v2128_v25  ;;  %v3249_v30 = vadd.f32 %v2209_v28, %v2208_v26 }
 0x22f   : > { %1548 = vrot.lane.b32.xlu1 %v3247_v29, %s2534_s7  ;;  %1614 = vrot.lane.b32.xlu0 %v3240_v23, %s2535_s28  ;;  %v2131_v32 = vpop.f32.mrb[4].mxu0  ;;  %v2211_v34 = vpop.f32.mrb[4].mxu1  ;;  %v1300_v44 = vmul.f32 %v3247_v29, %v3261_v38  ;;  %v1399_v51 = vmul.f32 %v3247_v29, %v3276_v48  ;;  %v1149_v57 = vmul.f32 %v3247_v29, %v3251_v31 }
 0x230   : > { %v2132_v33 = vpop.f32.mrb[5].mxu0  ;;  %v2212_v37 = vpop.f32.mrb[5].mxu1 }
 0x231   : > { %v3259_v36 = vadd.f32 %v2132_v33, %v2131_v32  ;;  %v3263_v39 = vadd.f32 %v2212_v37, %v2211_v34 }
 0x233   : > { %1616 = vrot.lane.b32.xlu1 %v3247_v29, %s2535_s28  ;;  %1180 = vrot.lane.b32.xlu0 %v1148_v35, %s2536_s27  ;;  %v2134_v40 = vpop.f32.mrb[6].mxu0  ;;  %v2214_v41 = vpop.f32.mrb[6].mxu1  ;;  %v1150_v54 = vmul.f32 %v3259_v36, %v3251_v31  ;;  %v1301_v10 = vmul.f32 %v3259_v36, %v3261_v38  ;;  %v1400_v15 = vmul.f32 %v3259_v36, %v3276_v48 }
 0x234   : > { %v2135_v42 = vpop.f32.mrb[7].mxu0  ;;  %v2215_v43 = vpop.f32.mrb[7].mxu1 }
 0x235   : > { %v3272_v46 = vadd.f32 %v2135_v42, %v2134_v40  ;;  %v3274_v47 = vadd.f32 %v2215_v43, %v2214_v41 }
 0x237   : > { %1333 = vrot.lane.b32.xlu1 %v1300_v44, %s2534_s7  ;;  %1331 = vrot.lane.b32.xlu0 %v1299_v45, %s2534_s7  ;;  %v2137_v49 = vpop.f32.mrb[8].mxu0  ;;  %v2217_v62 = vpop.f32.mrb[8].mxu1  ;;  %v1151_v9 = vmul.f32 %v3272_v46, %v3251_v31  ;;  %v1302_v14 = vmul.f32 %v3272_v46, %v3261_v38  ;;  %v1401_v19 = vmul.f32 %v3272_v46, %v3276_v48 }
 0x238   : > { %v2138_v50 = vpop.f32.mrb[9].mxu0  ;;  %v2218_v0 = vpop.f32.mrb[9].mxu1 }
 0x239   : > { %v3284_v53 = vadd.f32 %v2138_v50, %v2137_v49  ;;  %v3302_v2 = vadd.f32 %v2218_v0, %v2217_v62 }
 0x23b   : > { %1432 = vrot.lane.b32.xlu1 %v1399_v51, %s2535_s28  ;;  %1430 = vrot.lane.b32.xlu0 %v1398_v52, %s2535_s28  ;;  %v2140_v55 = vpop.f32.mrb[10].mxu0  ;;  %v2220_v4 = vpop.f32.mrb[10].mxu1  ;;  %v1152_v34 = vmul.f32 %v3284_v53, %v3251_v31  ;;  %v1303_v45 = vmul.f32 %v3284_v53, %v3261_v38 }
 0x23c   : > { %v2141_v56 = vpop.f32.mrb[11].mxu0  ;;  %v2221_v6 = vpop.f32.mrb[11].mxu1 }
 0x23d   : > { %v3292_v58 = vadd.f32 %v2141_v56, %v2140_v55  ;;  %v3310_v8 = vadd.f32 %v2221_v6, %v2220_v4 }
 0x23f   : > { %1184 = vrot.lane.b32.xlu1 %v1150_v54, %s2536_s27  ;;  %1182 = vrot.lane.b32.xlu0 %v1149_v57, %s2536_s27  ;;  %v2143_v59 = vpop.f32.mrb[12].mxu0  ;;  %v2223_v26 = vpop.f32.mrb[12].mxu1  ;;  %v1153_v44 = vmul.f32 %v3292_v58, %v3251_v31  ;;  %v1304_v52 = vmul.f32 %v3292_v58, %v3261_v38  ;;  %v1402_v54 = vmul.f32 %v3284_v53, %v3276_v48 }
 0x240   : > { %v2144_v60 = vpop.f32.mrb[13].mxu0  ;;  %v2224_v28 = vpop.f32.mrb[13].mxu1 }
 0x241   : > { %v3296_v61 = vadd.f32 %v2144_v60, %v2143_v59  ;;  %v3341_v33 = vadd.f32 %v2224_v28, %v2223_v26  ;;  %v1403_v59 = vmul.f32 %v3292_v58, %v3276_v48 }
 0x243   : > { %1552 = vrot.lane.b32.xlu1 %v3272_v46, %s2534_s7  ;;  %1550 = vrot.lane.b32.xlu0 %v3259_v36, %s2534_s7  ;;  %v2146_v63 = vpop.f32.mrb[14].mxu0  ;;  %v2226_v37 = vpop.f32.mrb[14].mxu1 }
 0x244   : > { %v2147_v1 = vpop.f32.mrb[15].mxu0  ;;  %v2227_v41 = vpop.f32.mrb[15].mxu1 }
 0x245   : > { %v3304_v3 = vadd.f32 %v2147_v1, %v2146_v63  ;;  %v3350_v43 = vadd.f32 %v2227_v41, %v2226_v37  ;;  %v1154_v1 = vmul.f32 %v3296_v61, %v3251_v31 }
 0x247   : > { %1620 = vrot.lane.b32.xlu1 %v3272_v46, %s2535_s28  ;;  %1618 = vrot.lane.b32.xlu0 %v3259_v36, %s2535_s28  ;;  %v2149_v5 = vpop.f32.mrb[16].mxu0  ;;  %v2229_v62 = vpop.f32.mrb[16].mxu1 }
 0x248   : > { %v2150_v7 = vpop.f32.mrb[17].mxu0  ;;  %v2230_v63 = vpop.f32.mrb[17].mxu1 }
 0x249   : > { %v3316_v11 = vadd.f32 %v2150_v7, %v2149_v5  ;;  %v3379_v0 = vadd.f32 %v2230_v63, %v2229_v62  ;;  %v1155_v7 = vmul.f32 %v3304_v3, %v3251_v31 }
 0x24b   : > { %1186 = vrot.lane.b32.xlu1 %v1151_v9, %s2536_s27  ;;  %1335 = vrot.lane.b32.xlu0 %v1301_v10, %s2534_s7  ;;  %v2152_v12 = vpop.f32.mrb[18].mxu0  ;;  %v2232_v4 = vpop.f32.mrb[18].mxu1  ;;  %v1305_v9 = vmul.f32 %v3296_v61, %v3261_v38  ;;  %v1306_v10 = vmul.f32 %v3304_v3, %v3261_v38 }
 0x24c   : > { %v2153_v13 = vpop.f32.mrb[19].mxu0  ;;  %v2233_v5 = vpop.f32.mrb[19].mxu1 }
 0x24d   : > { %v3324_v16 = vadd.f32 %v2153_v13, %v2152_v12  ;;  %v3386_v6 = vadd.f32 %v2233_v5, %v2232_v4  ;;  %v1404_v12 = vmul.f32 %v3296_v61, %v3276_v48  ;;  %v1405_v13 = vmul.f32 %v3304_v3, %v3276_v48  ;;  %v1129_v4 = vld [vmem:[%s3475_s18] sm:$0xff] }
 0x24f   : > { %1337 = vrot.lane.b32.xlu1 %v1302_v14, %s2534_s7  ;;  %1434 = vrot.lane.b32.xlu0 %v1400_v15, %s2535_s28  ;;  %v2155_v17 = vpop.f32.mrb[20].mxu0  ;;  %v2235_v14 = vpop.f32.mrb[20].mxu1  ;;  %v1157_v26 = vmul.f32 %v3324_v16, %v3251_v31  ;;  %v1308_v28 = vmul.f32 %v3324_v16, %v3261_v38 }
 0x250   : > { %v2156_v18 = vpop.f32.mrb[21].mxu0  ;;  %v2236_v15 = vpop.f32.mrb[21].mxu1 }
 0x251   : > { %v3330_v20 = vadd.f32 %v2156_v18, %v2155_v17  ;;  %v3409_v17 = vadd.f32 %v2236_v15, %v2235_v14  ;;  %v1156_v18 = vmul.f32 %v3316_v11, %v3251_v31 }
 0x253   : > { %1436 = vrot.lane.b32.xlu1 %v1401_v19, %s2535_s28  ;;  %1554 = vrot.lane.b32.xlu0 %v3284_v53, %s2534_s7  ;;  %v2158_v21 = vpop.f32.mrb[22].mxu0  ;;  %v2238_v19 = vpop.f32.mrb[22].mxu1 }
 0x254   : > { %v2159_v22 = vpop.f32.mrb[23].mxu0 }
 0x255   : > { %v3335_v25 = vadd.f32 %v2159_v22, %v2158_v21  ;;  %v2239_v21 = vpop.f32.mrb[23].mxu1 }
 0x256   : > { %v3416_v22 = vadd.f32 %v2239_v21, %v2238_v19 }
 0x257   : > { %1556 = vrot.lane.b32.xlu1 %v3292_v58, %s2534_s7  ;;  %1622 = vrot.lane.b32.xlu0 %v3284_v53, %s2535_s28  ;;  %v2161_v27 = vpop.f32.mrb[24].mxu0  ;;  %v2241_v37 = vpop.f32.mrb[24].mxu1 }
 0x258   : > { %v2162_v32 = vpop.f32.mrb[25].mxu0 }
 0x259   : > { %v3345_v35 = vadd.f32 %v2162_v32, %v2161_v27  ;;  %v1307_v27 = vmul.f32 %v3316_v11, %v3261_v38  ;;  %v1406_v32 = vmul.f32 %v3316_v11, %v3276_v48 }
 0x25b   : > { %1624 = vrot.lane.b32.xlu1 %v3292_v58, %s2535_s28  ;;  %1188 = vrot.lane.b32.xlu0 %v1152_v34, %s2536_s27  ;;  %v2164_v40 = vpop.f32.mrb[26].mxu0  ;;  %v1407_v34 = vmul.f32 %v3324_v16, %v3276_v48 }
 0x25c   : > { %v2165_v42 = vpop.f32.mrb[27].mxu0 }
 0x25d   : > { %v3356_v49 = vadd.f32 %v2165_v42, %v2164_v40  ;;  %v2242_v40 = vpop.f32.mrb[25].mxu1  ;;  %v1158_v42 = vmul.f32 %v3330_v20, %v3251_v31 }
 0x25e   : > { %v3439_v41 = vadd.f32 %v2242_v40, %v2241_v37 }
 0x25f   : > { %1190 = vrot.lane.b32.xlu1 %v1153_v44, %s2536_s27  ;;  %1339 = vrot.lane.b32.xlu0 %v1303_v45, %s2534_s7  ;;  %v2167_v50 = vpop.f32.mrb[28].mxu0  ;;  %v2244_v44 = vpop.f32.mrb[26].mxu1 }
 0x260   : > { %v2168_v51 = vpop.f32.mrb[29].mxu0  ;;  %v2245_v45 = vpop.f32.mrb[27].mxu1 }
 0x261   : > { %v3364_v55 = vadd.f32 %v2168_v51, %v2167_v50  ;;  %v3447_v50 = vadd.f32 %v2245_v45, %v2244_v44  ;;  %v1159_v51 = vmul.f32 %v3335_v25, %v3251_v31  ;;  %v2247_v15 = vpop.f32.mrb[28].mxu1 }
 0x263   : > { %1341 = vrot.lane.b32.xlu1 %v1304_v52, %s2534_s7  ;;  %1438 = vrot.lane.b32.xlu0 %v1402_v54, %s2535_s28  ;;  %v2170_v56 = vpop.f32.mrb[30].mxu0  ;;  %v1309_v52 = vmul.f32 %v3330_v20, %v3261_v38 }
 0x264   : > { %v2171_v57 = vpop.f32.mrb[31].mxu0 }
 0x265   : > { %v3370_v60 = vadd.f32 %v2171_v57, %v2170_v56  ;;  %v1310_v56 = vmul.f32 %v3335_v25, %v3261_v38  ;;  %v1408_v57 = vmul.f32 %v3330_v20, %v3276_v48 }
 0x267   : > { %4097 = vst [vmem:[#allocation12_spill] sm:$0xff] %v3370_v60  ;;  %1440 = vrot.lane.b32.xlu1 %v1403_v59, %s2535_s28  ;;  %1558 = vrot.lane.b32.xlu0 %v3296_v61, %s2534_s7  ;;  %v3463_v59 = vstv %s1262_s17 }
 0x268   : > { %v1264_v5 = vmul.f32 %v3242_v24, %v3463_v59 }
 0x26b   : > { %1560 = vrot.lane.b32.xlu1 %v3304_v3, %s2534_s7  ;;  %1626 = vrot.lane.b32.xlu0 %v3296_v61, %s2535_s28 }
 0x26f   : > { %1628 = vrot.lane.b32.xlu1 %v3304_v3, %s2535_s28  ;;  %1192 = vrot.lane.b32.xlu0 %v1154_v1, %s2536_s27  ;;  %v1409_v1 = vmul.f32 %v3335_v25, %v3276_v48 }
 0x273   : > { %1194 = vrot.lane.b32.xlu1 %v1155_v7, %s2536_s27  ;;  %1343 = vrot.lane.b32.xlu0 %v1305_v9, %s2534_s7  ;;  %v1265_v7 = vmul.f32 %v3249_v30, %v3463_v59 }
 0x277   : > { %1345 = vrot.lane.b32.xlu1 %v1306_v10, %s2534_s7  ;;  %1442 = vrot.lane.b32.xlu0 %v1404_v12, %s2535_s28  ;;  %v1246_v12 = vld [vmem:[%s3485_s6 + $0x8] sm:$0xff] }
 0x278   : > { %v1281_v19 = vadd.f32 %v1265_v7, %v1246_v12  ;;  %v1312_v12 = vmul.f32 %v3356_v49, %v3261_v38 }
 0x27b   : > { %1444 = vrot.lane.b32.xlu1 %v1405_v13, %s2535_s28  ;;  %1562 = vrot.lane.b32.xlu0 %v3316_v11, %s2534_s7  ;;  %v1245_v13 = vld [vmem:[%s3485_s6] sm:$0xff] }
 0x27c   : > { %v1280_v21 = vadd.f32 %v1264_v5, %v1245_v13  ;;  %v1130_v5 = vld [vmem:[%s3475_s18 + $0x8] sm:$0xff]  ;;  %v1410_v13 = vmul.f32 %v3345_v35, %v3276_v48 }
 0x27f   : > { %1564 = vrot.lane.b32.xlu1 %v3324_v16, %s2534_s7  ;;  %1630 = vrot.lane.b32.xlu0 %v3316_v11, %s2535_s28 }
 0x283   : > { %1632 = vrot.lane.b32.xlu1 %v3324_v16, %s2535_s28  ;;  %1196 = vrot.lane.b32.xlu0 %v1156_v18, %s2536_s27  ;;  %v2248_v18 = vpop.f32.mrb[29].mxu1 }
 0x287   : > { %1198 = vrot.lane.b32.xlu1 %v1157_v26, %s2536_s27  ;;  %1347 = vrot.lane.b32.xlu0 %v1307_v27, %s2534_s7  ;;  %v3498_v26 = vadd.f32 %v2248_v18, %v2247_v15 }
 0x28b   : > { %1349 = vrot.lane.b32.xlu1 %v1308_v28, %s2534_s7  ;;  %1446 = vrot.lane.b32.xlu0 %v1406_v32, %s2535_s28  ;;  %v1160_v32 = vmul.f32 %v3345_v35, %v3251_v31 }
 0x28f   : > { %1448 = vrot.lane.b32.xlu1 %v1407_v34, %s2535_s28  ;;  %1566 = vrot.lane.b32.xlu0 %v3330_v20, %s2534_s7  ;;  %v2250_v34 = vpop.f32.mrb[30].mxu1 }
 0x290   : > { %v2251_v37 = vpop.f32.mrb[31].mxu1 }
 0x291   : > { %v3505_v44 = vadd.f32 %v2251_v37, %v2250_v34  ;;  %v1247_v37 = vld [vmem:[%s3485_s6 + $0x10] sm:$0xff] }
 0x293   : > { %1568 = vrot.lane.b32.xlu1 %v3335_v25, %s2534_s7  ;;  %1634 = vrot.lane.b32.xlu0 %v3330_v20, %s2535_s28 }
 0x297   : > { %1636 = vrot.lane.b32.xlu1 %v3335_v25, %s2535_s28  ;;  %1200 = vrot.lane.b32.xlu0 %v1158_v42, %s2536_s27 }
 0x29b   : > { %1202 = vrot.lane.b32.xlu1 %v1159_v51, %s2536_s27  ;;  %1351 = vrot.lane.b32.xlu0 %v1309_v52, %s2534_s7  ;;  %v1161_v52 = vmul.f32 %v3356_v49, %v3251_v31 }
 0x29d   : > { %v3455_v54 = vpop.permute.xlu0 %1546 }
 0x29f   : > { %1353 = vrot.lane.b32.xlu1 %v1310_v56, %s2534_s7  ;;  %1450 = vrot.lane.b32.xlu0 %v1408_v57, %s2535_s28  ;;  %v1311_v56 = vmul.f32 %v3345_v35, %v3261_v38 }
 0x2a1   : > { %v3465_v62 = vpop.permute.xlu1 %1548  ;;  %v3467_v63 = vpop.permute.xlu0 %1614 }
 0x2a3   : > { %1452 = vrot.lane.b32.xlu1 %v1409_v1, %s2535_s28  ;;  %1570 = vrot.lane.b32.xlu0 %v3345_v35, %s2534_s7 }
 0x2a5   : > { %v3482_v9 = vpop.permute.xlu1 %1616  ;;  %v1181_v10 = vpop.permute.xlu0 %1180 }
 0x2a6   : > { %v3489_v14 = vadd.f32 %v1181_v10, %v1129_v4  ;;  %v1131_v4 = vld [vmem:[%s3475_s18 + $0x10] sm:$0xff] }
 0x2a7   : > { %1572 = vrot.lane.b32.xlu1 %v3356_v49, %s2534_s7  ;;  %1638 = vrot.lane.b32.xlu0 %v3345_v35, %s2535_s28 }
 0x2a8   : > { %1495 = vst.msk [vmem:[%s3475_s18] sm:$0xff] %vm1494_vm5, %v3489_v14 }
 0x2a9   : > { %v1334_v27 = vpop.permute.xlu1 %1333  ;;  %v1332_v28 = vpop.permute.xlu0 %1331 }
 0x2aa   : > { %v1380_v40 = vadd.f32 %v1334_v27, %v1281_v19  ;;  %v1379_v42 = vadd.f32 %v1332_v28, %v1280_v21  ;;  %v1411_v27 = vmul.f32 %v3356_v49, %v3276_v48  ;;  %v1266_v28 = vmul.f32 %v3263_v39, %v3463_v59 }
 0x2ab   : > { %1640 = vrot.lane.b32.xlu1 %v3356_v49, %s2535_s28  ;;  %1204 = vrot.lane.b32.xlu0 %v1160_v32, %s2536_s27 }
 0x2ad   : > { %v1433_v45 = vpop.permute.xlu1 %1432  ;;  %v1431_v51 = vpop.permute.xlu0 %1430 }
 0x2ae   : > { %v3511_v57 = vadd.f32 %v1433_v45, %v1380_v40  ;;  %v3513_v1 = vadd.f32 %v1431_v51, %v1379_v42  ;;  %v1132_v40 = vld [vmem:[%s3475_s18 + $0x18] sm:$0xff]  ;;  %v1267_v42 = vmul.f32 %v3274_v47, %v3463_v59  ;;  %v1282_v45 = vadd.f32 %v1266_v28, %v1247_v37 }
 0x2af   : > { %1206 = vrot.lane.b32.xlu1 %v1161_v52, %s2536_s27  ;;  %1355 = vrot.lane.b32.xlu0 %v1311_v56, %s2534_s7  ;;  %v1162_v56 = vmul.f32 %v3364_v55, %v3251_v31  ;;  %v1313_v28 = vmul.f32 %v3364_v55, %v3261_v38 }
 0x2b0   : > { %1512 = vst.msk [vmem:[%s3485_s6 + $0x8] sm:$0xff] %vm1494_vm5, %v3511_v57  ;;  %1511 = vst.msk [vmem:[%s3485_s6] sm:$0xff] %vm1494_vm5, %v3513_v1 }
 0x2b1   : > { %v1185_v7 = vpop.permute.xlu1 %1184  ;;  %v1183_v10 = vpop.permute.xlu0 %1182 }
 0x2b2   : > { %v3529_v15 = vadd.f32 %v1185_v7, %v1131_v4  ;;  %v3531_v18 = vadd.f32 %v1183_v10, %v1130_v5  ;;  %v1248_v4 = vld [vmem:[%s3485_s6 + $0x18] sm:$0xff] }
 0x2b3   : > { %1357 = vrot.lane.b32.xlu1 %v1312_v12, %s2534_s7  ;;  %1454 = vrot.lane.b32.xlu0 %v1410_v13, %s2535_s28  ;;  %v1283_v10 = vadd.f32 %v1267_v42, %v1248_v4  ;;  %v1528_v42 = vstv %s1527_s14 }
 0x2b4   : > { %1497 = vst.msk [vmem:[%s3475_s18 + $0x10] sm:$0xff] %vm1494_vm5, %v3529_v15  ;;  %1496 = vst.msk [vmem:[%s3475_s18 + $0x8] sm:$0xff] %vm1494_vm5, %v3531_v18  ;;  %vm3599_vm6 = vcmp.eq.s32.totalorder %v1528_v42, 1 }
 0x2b5   : > { %v3541_v19 = vpop.permute.xlu1 %1552  ;;  %v3543_v21 = vpop.permute.xlu0 %1550 }
 0x2b7   : > { %1456 = vrot.lane.b32.xlu1 %v1411_v27, %s2535_s28  ;;  %1574 = vrot.lane.b32.xlu0 %v3364_v55, %s2534_s7  ;;  %v1163_v27 = vmul.f32 %v3370_v60, %v3251_v31  ;;  %v1314_v31 = vmul.f32 %v3370_v60, %v3261_v38 }
 0x2b9   : > { %v3552_v32 = vpop.permute.xlu1 %1620  ;;  %v3554_v34 = vpop.permute.xlu0 %1618 }
 0x2bb   : > { %1576 = vrot.lane.b32.xlu1 %v3370_v60, %s2534_s7  ;;  %1642 = vrot.lane.b32.xlu0 %v3364_v55, %s2535_s28 }
 0x2bd   : > { %v1187_v51 = vpop.permute.xlu1 %1186  ;;  %v1336_v52 = vpop.permute.xlu0 %1335 }
 0x2be   : > { %v3567_v5 = vadd.f32 %v1187_v51, %v1132_v40  ;;  %v1381_v7 = vadd.f32 %v1336_v52, %v1282_v45  ;;  %v1412_v52 = vmul.f32 %v3364_v55, %v3276_v48 }
 0x2bf   : > { %1644 = vrot.lane.b32.xlu1 %v3370_v60, %s2535_s28  ;;  %1208 = vrot.lane.b32.xlu0 %v1162_v56, %s2536_s27 }
 0x2c0   : > { %1498 = vst.msk [vmem:[%s3475_s18 + $0x18] sm:$0xff] %vm1494_vm5, %v3567_v5 }
 0x2c1   : > { %v1338_v12 = vpop.permute.xlu1 %1337  ;;  %v1435_v13 = vpop.permute.xlu0 %1434 }
 0x2c2   : > { %v3582_v37 = vadd.f32 %v1435_v13, %v1381_v7  ;;  %v1382_v40 = vadd.f32 %v1338_v12, %v1283_v10  ;;  %v1612_v7 = vstv %s1611_s22  ;;  %v1413_v12 = vmul.f32 %v3370_v60, %v3276_v48 }
 0x2c3   : > { %1210 = vrot.lane.b32.xlu1 %v1163_v27, %s2536_s27  ;;  %1359 = vrot.lane.b32.xlu0 %v1313_v28, %s2534_s7  ;;  %v1594_v13 = vsel %vm3599_vm6, %v3242_v24, %v3455_v54  ;;  %v1133_v27 = vld [vmem:[%s3475_s18 + $0x20] sm:$0xff]  ;;  %vm3619_vm7 = vcmp.eq.s32.totalorder %v1612_v7, 1  ;;  %v1268_v48 = vmul.f32 %v3302_v2, %v3463_v59  ;;  %v1134_v7 = vld [vmem:[%s3475_s18 + $0x28] sm:$0xff] }
 0x2c4   : > { %1513 = vst.msk [vmem:[%s3485_s6 + $0x10] sm:$0xff] %vm1494_vm5, %v3582_v37  ;;  %v1249_v54 = vld [vmem:[%s3485_s6 + $0x20] sm:$0xff] }
 0x2c5   : > { %v1437_v45 = vpop.permute.xlu1 %1436  ;;  %v3589_v51 = vpop.permute.xlu0 %1554 }
 0x2c6   : > { %v3595_v56 = vadd.f32 %v1437_v45, %v1382_v40 }
 0x2c7   : > { %1361 = vrot.lane.b32.xlu1 %v1314_v31, %s2534_s7  ;;  %1458 = vrot.lane.b32.xlu0 %v1412_v52, %s2535_s28  ;;  %v1595_v31 = vsel %vm3599_vm6, %v3249_v30, %v3465_v62  ;;  %v1662_v52 = vsel %vm3619_vm7, %v3242_v24, %v3467_v63  ;;  %v1663_v24 = vsel %vm3619_vm7, %v3249_v30, %v3482_v9 }
 0x2c8   : > { %1514 = vst.msk [vmem:[%s3485_s6 + $0x18] sm:$0xff] %vm1494_vm5, %v3595_v56  ;;  %v1596_v30 = vsel %vm3599_vm6, %v3263_v39, %v3543_v21 }
 0x2c9   : > { %v3606_v10 = vpop.permute.xlu1 %1556  ;;  %v3608_v38 = vpop.permute.xlu0 %1622 }
 0x2cb   : > { %1460 = vrot.lane.b32.xlu1 %v1413_v12, %s2535_s28  ;;  %1694 = vrot.lane.b32.xlu0 %v1594_v13, %s2537_s11  ;;  %v1269_v12 = vmul.f32 %v3310_v8, %v3463_v59  ;;  %v1284_v13 = vadd.f32 %v1268_v48, %v1249_v54 }
 0x2cd   : > { %v3625_v40 = vpop.permute.xlu1 %1624  ;;  %v1189_v42 = vpop.permute.xlu0 %1188 }
 0x2ce   : > { %v3628_v45 = vadd.f32 %v1189_v42, %v1133_v27  ;;  %v1250_v42 = vld [vmem:[%s3485_s6 + $0x28] sm:$0xff] }
 0x2cf   : > { %1696 = vrot.lane.b32.xlu1 %v1595_v31, %s2537_s11  ;;  %1758 = vrot.lane.b32.xlu0 %v1662_v52, %s2538_s9  ;;  %v1285_v48 = vadd.f32 %v1269_v12, %v1250_v42 }
 0x2d0   : > { %1499 = vst.msk [vmem:[%s3475_s18 + $0x20] sm:$0xff] %vm1494_vm5, %v3628_v45 }
 0x2d1   : > { %v1191_v62 = vpop.permute.xlu1 %1190  ;;  %v1340_v27 = vpop.permute.xlu0 %1339 }
 0x2d2   : > { %v3647_v60 = vadd.f32 %v1191_v62, %v1134_v7  ;;  %v1383_v63 = vadd.f32 %v1340_v27, %v1284_v13  ;;  %v1597_v13 = vsel %vm3599_vm6, %v3274_v47, %v3541_v19  ;;  %v1665_v19 = vsel %vm3619_vm7, %v3274_v47, %v3552_v32  ;;  %v1136_v32 = vld [vmem:[%s3475_s18 + $0x38] sm:$0xff] }
 0x2d3   : > { %1760 = vrot.lane.b32.xlu1 %v1663_v24, %s2538_s9  ;;  %1874 = vrot.lane.b32.xlu0 %v3513_v1, %s2539_s26  ;;  %v1251_v24 = vld [vmem:[%s3485_s6 + $0x30] sm:$0xff]  ;;  %v1598_v47 = vsel %vm3599_vm6, %v3302_v2, %v3589_v51  ;;  %v1599_v51 = vsel %vm3599_vm6, %v3310_v8, %v3606_v10  ;;  %v1667_v10 = vsel %vm3619_vm7, %v3310_v8, %v3625_v40 }
 0x2d4   : > { %1500 = vst.msk [vmem:[%s3475_s18 + $0x28] sm:$0xff] %vm1494_vm5, %v3647_v60 }
 0x2d5   : > { %v1342_v54 = vpop.permute.xlu1 %1341  ;;  %v1439_v31 = vpop.permute.xlu0 %1438 }
 0x2d6   : > { %v1482_v52 = vadd.f32 %v1439_v31, %v1383_v63  ;;  %v1384_v9 = vadd.f32 %v1342_v54, %v1285_v48  ;;  %v1271_v48 = vmul.f32 %v3350_v43, %v3463_v59 }
 0x2d7   : > { %1876 = vrot.lane.b32.xlu1 %v3511_v57, %s2539_s26  ;;  %1698 = vrot.lane.b32.xlu0 %v1596_v30, %s2537_s11  ;;  %v1664_v57 = vsel %vm3619_vm7, %v3263_v39, %v3554_v34  ;;  %v1135_v39 = vld [vmem:[%s3475_s18 + $0x30] sm:$0xff]  ;;  %v1270_v34 = vmul.f32 %v3341_v33, %v3463_v59  ;;  %v1252_v30 = vld [vmem:[%s3485_s6 + $0x38] sm:$0xff] }
 0x2d8   : > { %1515 = vst.msk [vmem:[%s3485_s6 + $0x20] sm:$0xff] %vm1494_vm5, %v1482_v52 }
 0x2d9   : > { %v1441_v1 = vpop.permute.xlu1 %1440  ;;  %v1559_v7 = vpop.permute.xlu0 %1558 }
 0x2da   : > { %v1483_v12 = vadd.f32 %v1441_v1, %v1384_v9 }
 0x2db   : > { %1700 = vrot.lane.b32.xlu1 %v1597_v13, %s2537_s11  ;;  %1762 = vrot.lane.b32.xlu0 %v1664_v57, %s2538_s9  ;;  %v1287_v13 = vadd.f32 %v1271_v48, %v1252_v30  ;;  %v1253_v48 = vld [vmem:[%s3485_s6 + $0x40] sm:$0xff] }
 0x2dc   : > { %1516 = vst.msk [vmem:[%s3485_s6 + $0x28] sm:$0xff] %vm1494_vm5, %v1483_v12 }
 0x2dd   : > { %v1561_v21 = vpop.permute.xlu1 %1560  ;;  %v1627_v62 = vpop.permute.xlu0 %1626 }
 0x2df   : > { %1764 = vrot.lane.b32.xlu1 %v1665_v19, %s2538_s9  ;;  %1878 = vrot.lane.b32.xlu0 %v3582_v37, %s2539_s26  ;;  %v1286_v37 = vadd.f32 %v1270_v34, %v1251_v24 }
 0x2e1   : > { %v1629_v27 = vpop.permute.xlu1 %1628  ;;  %v1193_v42 = vpop.permute.xlu0 %1192 }
 0x2e2   : > { %v3691_v63 = vadd.f32 %v1193_v42, %v1135_v39  ;;  %v1600_v42 = vsel %vm3599_vm6, %v3341_v33, %v1559_v7  ;;  %v1137_v7 = vld [vmem:[%s3475_s18 + $0x40] sm:$0xff] }
 0x2e3   : > { %1880 = vrot.lane.b32.xlu1 %v3595_v56, %s2539_s26  ;;  %1702 = vrot.lane.b32.xlu0 %v1598_v47, %s2537_s11  ;;  %v1666_v56 = vsel %vm3619_vm7, %v3302_v2, %v3608_v38  ;;  %v1668_v47 = vsel %vm3619_vm7, %v3341_v33, %v1627_v62  ;;  %v1138_v33 = vld [vmem:[%s3475_s18 + $0x48] sm:$0xff] }
 0x2e4   : > { %1501 = vst.msk [vmem:[%s3475_s18 + $0x30] sm:$0xff] %vm1494_vm5, %v3691_v63 }
 0x2e5   : > { %v1195_v54 = vpop.permute.xlu1 %1194  ;;  %v1344_v31 = vpop.permute.xlu0 %1343 }
 0x2e6   : > { %v3707_v9 = vadd.f32 %v1195_v54, %v1136_v32  ;;  %v1385_v1 = vadd.f32 %v1344_v31, %v1286_v37  ;;  %v1273_v31 = vmul.f32 %v3386_v6, %v3463_v59 }
 0x2e7   : > { %1704 = vrot.lane.b32.xlu1 %v1599_v51, %s2537_s11  ;;  %1766 = vrot.lane.b32.xlu0 %v1666_v56, %s2538_s9  ;;  %v1254_v56 = vld [vmem:[%s3485_s6 + $0x48] sm:$0xff] }
 0x2e8   : > { %1502 = vst.msk [vmem:[%s3475_s18 + $0x38] sm:$0xff] %vm1494_vm5, %v3707_v9 }
 0x2e9   : > { %v1346_v57 = vpop.permute.xlu1 %1345  ;;  %v1443_v19 = vpop.permute.xlu0 %1442 }
 0x2ea   : > { %v1484_v39 = vadd.f32 %v1443_v19, %v1385_v1  ;;  %v1386_v2 = vadd.f32 %v1346_v57, %v1287_v13  ;;  %v1289_v13 = vadd.f32 %v1273_v31, %v1254_v56  ;;  %v1275_v31 = vmul.f32 %v3416_v22, %v3463_v59  ;;  %v1256_v56 = vld [vmem:[%s3485_s6 + $0x58] sm:$0xff] }
 0x2eb   : > { %1768 = vrot.lane.b32.xlu1 %v1667_v10, %s2538_s9  ;;  %1882 = vrot.lane.b32.xlu0 %v1482_v52, %s2539_s26  ;;  %v1601_v52 = vsel %vm3599_vm6, %v3350_v43, %v1561_v21  ;;  %v1669_v21 = vsel %vm3619_vm7, %v3350_v43, %v1629_v27 }
 0x2ec   : > { %1517 = vst.msk [vmem:[%s3485_s6 + $0x30] sm:$0xff] %vm1494_vm5, %v1484_v39 }
 0x2ed   : > { %v1445_v38 = vpop.permute.xlu1 %1444  ;;  %v1563_v34 = vpop.permute.xlu0 %1562 }
 0x2ee   : > { %v1485_v24 = vadd.f32 %v1445_v38, %v1386_v2  ;;  %v1602_v43 = vsel %vm3599_vm6, %v3379_v0, %v1563_v34 }
 0x2ef   : > { %1884 = vrot.lane.b32.xlu1 %v1483_v12, %s2539_s26  ;;  %1706 = vrot.lane.b32.xlu0 %v1600_v42, %s2537_s11  ;;  %v1272_v12 = vmul.f32 %v3379_v0, %v3463_v59 }
 0x2f0   : > { %1518 = vst.msk [vmem:[%s3485_s6 + $0x38] sm:$0xff] %vm1494_vm5, %v1485_v24 }
 0x2f1   : > { %v1565_v8 = vpop.permute.xlu1 %1564  ;;  %v1631_v40 = vpop.permute.xlu0 %1630  ;;  %v1288_v62 = vadd.f32 %v1272_v12, %v1253_v48 }
 0x2f2   : > { %v1670_v10 = vsel %vm3619_vm7, %v3379_v0, %v1631_v40 }
 0x2f3   : > { %1708 = vrot.lane.b32.xlu1 %v1601_v52, %s2537_s11  ;;  %1770 = vrot.lane.b32.xlu0 %v1668_v47, %s2538_s9  ;;  %v1274_v47 = vmul.f32 %v3409_v17, %v3463_v59 }
 0x2f5   : > { %v1633_v32 = vpop.permute.xlu1 %1632  ;;  %v1197_v37 = vpop.permute.xlu0 %1196 }
 0x2f6   : > { %v3752_v54 = vadd.f32 %v1197_v37, %v1137_v7 }
 0x2f7   : > { %1772 = vrot.lane.b32.xlu1 %v1669_v21, %s2538_s9  ;;  %1886 = vrot.lane.b32.xlu0 %v1484_v39, %s2539_s26  ;;  %v1603_v39 = vsel %vm3599_vm6, %v3386_v6, %v1565_v8 }
 0x2f8   : > { %1503 = vst.msk [vmem:[%s3475_s18 + $0x40] sm:$0xff] %vm1494_vm5, %v3752_v54 }
 0x2f9   : > { %v1199_v30 = vpop.permute.xlu1 %1198  ;;  %v1348_v51 = vpop.permute.xlu0 %1347 }
 0x2fa   : > { %v3766_v27 = vadd.f32 %v1199_v30, %v1138_v33  ;;  %v1387_v1 = vadd.f32 %v1348_v51, %v1288_v62  ;;  %v1140_v33 = vld [vmem:[%s3475_s18 + $0x58] sm:$0xff] }
 0x2fb   : > { %1888 = vrot.lane.b32.xlu1 %v1485_v24, %s2539_s26  ;;  %1710 = vrot.lane.b32.xlu0 %v1602_v43, %s2537_s11  ;;  %v1671_v24 = vsel %vm3619_vm7, %v3386_v6, %v1633_v32  ;;  %v1139_v6 = vld [vmem:[%s3475_s18 + $0x50] sm:$0xff] }
 0x2fc   : > { %1504 = vst.msk [vmem:[%s3475_s18 + $0x48] sm:$0xff] %vm1494_vm5, %v3766_v27  ;;  %v1255_v32 = vld [vmem:[%s3485_s6 + $0x50] sm:$0xff] }
 0x2fd   : > { %v1350_v57 = vpop.permute.xlu1 %1349  ;;  %v1447_v19 = vpop.permute.xlu0 %1446  ;;  %v1290_v62 = vadd.f32 %v1274_v47, %v1255_v32 }
 0x2fe   : > { %v1486_v2 = vadd.f32 %v1447_v19, %v1387_v1  ;;  %v1388_v38 = vadd.f32 %v1350_v57, %v1289_v13  ;;  %v1291_v13 = vadd.f32 %v1275_v31, %v1256_v56  ;;  %v1258_v31 = vld [vmem:[%s3485_s6 + $0x68] sm:$0xff] }
 0x2ff   : > { %1712 = vrot.lane.b32.xlu1 %v1603_v39, %s2537_s11  ;;  %1774 = vrot.lane.b32.xlu0 %v1670_v10, %s2538_s9 }
 0x300   : > { %1519 = vst.msk [vmem:[%s3485_s6 + $0x40] sm:$0xff] %vm1494_vm5, %v1486_v2 }
 0x301   : > { %v1449_v34 = vpop.permute.xlu1 %1448  ;;  %v1567_v42 = vpop.permute.xlu0 %1566 }
 0x302   : > { %v1487_v8 = vadd.f32 %v1449_v34, %v1388_v38  ;;  %v1604_v52 = vsel %vm3599_vm6, %v3409_v17, %v1567_v42 }
 0x303   : > { %1776 = vrot.lane.b32.xlu1 %v1671_v24, %s2538_s9  ;;  %1890 = vrot.lane.b32.xlu0 %v1486_v2, %s2539_s26 }
 0x304   : > { %1520 = vst.msk [vmem:[%s3485_s6 + $0x48] sm:$0xff] %vm1494_vm5, %v1487_v8 }
 0x305   : > { %v1569_v0 = vpop.permute.xlu1 %1568  ;;  %v1635_v40 = vpop.permute.xlu0 %1634 }
 0x306   : > { %v1605_v37 = vsel %vm3599_vm6, %v3416_v22, %v1569_v0  ;;  %v1672_v48 = vsel %vm3619_vm7, %v3409_v17, %v1635_v40  ;;  %v1141_v40 = vld [vmem:[%s3475_s18 + $0x60] sm:$0xff] }
 0x307   : > { %1892 = vrot.lane.b32.xlu1 %v1487_v8, %s2539_s26  ;;  %1714 = vrot.lane.b32.xlu0 %v1604_v52, %s2537_s11  ;;  %v1276_v52 = vmul.f32 %v3439_v41, %v3463_v59 }
 0x309   : > { %v1637_v7 = vpop.permute.xlu1 %1636  ;;  %v1201_v12 = vpop.permute.xlu0 %1200 }
 0x30a   : > { %v3805_v21 = vadd.f32 %v1201_v12, %v1139_v6  ;;  %v1673_v17 = vsel %vm3619_vm7, %v3416_v22, %v1637_v7  ;;  %v1257_v7 = vld [vmem:[%s3485_s6 + $0x60] sm:$0xff] }
 0x30b   : > { %1716 = vrot.lane.b32.xlu1 %v1605_v37, %s2537_s11  ;;  %1778 = vrot.lane.b32.xlu0 %v1672_v48, %s2538_s9  ;;  %v1142_v37 = vld [vmem:[%s3475_s18 + $0x68] sm:$0xff]  ;;  %v1292_v48 = vadd.f32 %v1276_v52, %v1257_v7 }
 0x30c   : > { %1505 = vst.msk [vmem:[%s3475_s18 + $0x50] sm:$0xff] %vm1494_vm5, %v3805_v21 }
 0x30d   : > { %v1203_v30 = vpop.permute.xlu1 %1202  ;;  %v1352_v51 = vpop.permute.xlu0 %1351 }
 0x30e   : > { %v3819_v43 = vadd.f32 %v1203_v30, %v1140_v33  ;;  %v1389_v1 = vadd.f32 %v1352_v51, %v1290_v62 }
 0x30f   : > { %1780 = vrot.lane.b32.xlu1 %v1673_v17, %s2538_s9 }
 0x310   : > { %1506 = vst.msk [vmem:[%s3475_s18 + $0x58] sm:$0xff] %vm1494_vm5, %v3819_v43 }
 0x311   : > { %v1354_v57 = vpop.permute.xlu1 %1353  ;;  %v1451_v19 = vpop.permute.xlu0 %1450 }
 0x312   : > { %v1488_v39 = vadd.f32 %v1451_v19, %v1389_v1  ;;  %v1390_v10 = vadd.f32 %v1354_v57, %v1291_v13 }
 0x314   : > { %1521 = vst.msk [vmem:[%s3485_s6 + $0x50] sm:$0xff] %vm1494_vm5, %v1488_v39  ;;  %1894 = vrot.lane.b32.xlu0 %v1488_v39, %s2539_s26 }
 0x315   : > { %v1453_v22 = vpop.permute.xlu1 %1452  ;;  %v1571_v2 = vpop.permute.xlu0 %1570 }
 0x316   : > { %v1489_v38 = vadd.f32 %v1453_v22, %v1390_v10  ;;  %v1606_v34 = vsel %vm3599_vm6, %v3439_v41, %v1571_v2 }
 0x318   : > { %1522 = vst.msk [vmem:[%s3485_s6 + $0x58] sm:$0xff] %vm1494_vm5, %v1489_v38  ;;  %1896 = vrot.lane.b32.xlu1 %v1489_v38, %s2539_s26  ;;  %1718 = vrot.lane.b32.xlu0 %v1606_v34, %s2537_s11 }
 0x319   : > { %v1573_v42 = vpop.permute.xlu1 %1572  ;;  %v1639_v24 = vpop.permute.xlu0 %1638 }
 0x31a   : > { %v1607_v8 = vsel %vm3599_vm6, %v3447_v50, %v1573_v42  ;;  %v1674_v0 = vsel %vm3619_vm7, %v3439_v41, %v1639_v24  ;;  %v1277_v41 = vmul.f32 %v3447_v50, %v3463_v59  ;;  %v1143_v42 = vld [vmem:[%s3475_s18 + $0x70] sm:$0xff]  ;;  %v1278_v24 = vmul.f32 %v3498_v26, %v3463_v59 }
 0x31c   : > { %1720 = vrot.lane.b32.xlu1 %v1607_v8, %s2537_s11  ;;  %1782 = vrot.lane.b32.xlu0 %v1674_v0, %s2538_s9  ;;  %v1293_v56 = vadd.f32 %v1277_v41, %v1258_v31 }
 0x31d   : > { %v1641_v6 = vpop.permute.xlu1 %1640  ;;  %v1205_v47 = vpop.permute.xlu0 %1204 }
 0x31e   : > { %v1675_v12 = vsel %vm3619_vm7, %v3447_v50, %v1641_v6  ;;  %v3850_v32 = vadd.f32 %v1205_v47, %v1141_v40  ;;  %v1259_v40 = vld [vmem:[%s3485_s6 + $0x70] sm:$0xff]  ;;  %v1144_v6 = vld [vmem:[%s3475_s18 + $0x78] sm:$0xff] }
 0x31f   : > { %v1294_v47 = vadd.f32 %v1278_v24, %v1259_v40 }
 0x320   : > { %1507 = vst.msk [vmem:[%s3475_s18 + $0x60] sm:$0xff] %vm1494_vm5, %v3850_v32  ;;  %1784 = vrot.lane.b32.xlu1 %v1675_v12, %s2538_s9 }
 0x321   : > { %v1207_v33 = vpop.permute.xlu1 %1206  ;;  %v1356_v62 = vpop.permute.xlu0 %1355 }
 0x322   : > { %v3860_v30 = vadd.f32 %v1207_v33, %v1142_v37  ;;  %v1391_v51 = vadd.f32 %v1356_v62, %v1292_v48  ;;  %v1260_v37 = vld [vmem:[%s3485_s6 + $0x78] sm:$0xff] }
 0x324   : > { %1508 = vst.msk [vmem:[%s3475_s18 + $0x68] sm:$0xff] %vm1494_vm5, %v3860_v30 }
 0x325   : > { %v1358_v17 = vpop.permute.xlu1 %1357  ;;  %v1455_v1 = vpop.permute.xlu0 %1454 }
 0x326   : > { %v1490_v13 = vadd.f32 %v1455_v1, %v1391_v51  ;;  %v1392_v57 = vadd.f32 %v1358_v17, %v1293_v56 }
 0x328   : > { %1523 = vst.msk [vmem:[%s3485_s6 + $0x60] sm:$0xff] %vm1494_vm5, %v1490_v13  ;;  %1898 = vrot.lane.b32.xlu0 %v1490_v13, %s2539_s26 }
 0x329   : > { %v1457_v50 = vpop.permute.xlu1 %1456  ;;  %v1575_v19 = vpop.permute.xlu0 %1574 }
 0x32a   : > { %v1491_v39 = vadd.f32 %v1457_v50, %v1392_v57  ;;  %v1608_v10 = vsel %vm3599_vm6, %v3498_v26, %v1575_v19 }
 0x32c   : > { %1524 = vst.msk [vmem:[%s3485_s6 + $0x68] sm:$0xff] %vm1494_vm5, %v1491_v39  ;;  %1900 = vrot.lane.b32.xlu1 %v1491_v39, %s2539_s26  ;;  %1722 = vrot.lane.b32.xlu0 %v1608_v10, %s2537_s11 }
 0x32d   : > { %v1577_v22 = vpop.permute.xlu1 %1576  ;;  %v1643_v2 = vpop.permute.xlu0 %1642 }
 0x32e   : > { %v1609_v38 = vsel %vm3599_vm6, %v3505_v44, %v1577_v22  ;;  %v1676_v34 = vsel %vm3619_vm7, %v3498_v26, %v1643_v2  ;;  %v1279_v26 = vmul.f32 %v3505_v44, %v3463_v59 }
 0x330   : > { %1724 = vrot.lane.b32.xlu1 %v1609_v38, %s2537_s11  ;;  %1786 = vrot.lane.b32.xlu0 %v1676_v34, %s2538_s9  ;;  %v1295_v41 = vadd.f32 %v1279_v26, %v1260_v37 }
 0x331   : > { %v1645_v8 = vpop.permute.xlu1 %1644  ;;  %v1209_v0 = vpop.permute.xlu0 %1208 }
 0x332   : > { %v1677_v4 = vsel %vm3619_vm7, %v3505_v44, %v1645_v8  ;;  %v3890_v52 = vadd.f32 %v1209_v0, %v1143_v42 }
 0x334   : > { %1509 = vst.msk [vmem:[%s3475_s18 + $0x70] sm:$0xff] %vm1494_vm5, %v3890_v52  ;;  %1788 = vrot.lane.b32.xlu1 %v1677_v4, %s2538_s9 }
 0x335   : > { %v1211_v7 = vpop.permute.xlu1 %1210  ;;  %v1360_v12 = vpop.permute.xlu0 %1359 }
 0x336   : > { %v3900_v48 = vadd.f32 %v1211_v7, %v1144_v6  ;;  %v1393_v28 = vadd.f32 %v1360_v12, %v1294_v47 }
 0x338   : > { %1510 = vst.msk [vmem:[%s3475_s18 + $0x78] sm:$0xff] %vm1494_vm5, %v3900_v48 }
 0x339   : > { %v1362_v33 = vpop.permute.xlu1 %1361  ;;  %v1459_v62 = vpop.permute.xlu0 %1458 }
 0x33a   : > { %v1492_v31 = vadd.f32 %v1459_v62, %v1393_v28  ;;  %v1394_v51 = vadd.f32 %v1362_v33, %v1295_v41 }
 0x33c   : > { %1525 = vst.msk [vmem:[%s3485_s6 + $0x70] sm:$0xff] %vm1494_vm5, %v1492_v31  ;;  %1902 = vrot.lane.b32.xlu0 %v1492_v31, %s2539_s26 }
 0x33d   : > { %v1461_v59 = vpop.permute.xlu1 %1460  ;;  %v1695_v44 = vpop.permute.xlu0 %1694 }
 0x33e   : > { %v1493_v56 = vadd.f32 %v1461_v59, %v1394_v51  ;;  %v1807_v17 = vsel %vm1806_vm8, %v3240_v23, %v1695_v44 }
 0x340   : > { %1526 = vst.msk [vmem:[%s3485_s6 + $0x78] sm:$0xff] %vm1494_vm5, %v1493_v56  ;;  %1904 = vrot.lane.b32.xlu1 %v1493_v56, %s2539_s26 }
 0x341   : > { %v1697_v1 = vpop.permute.xlu1 %1696  ;;  %v1759_v13 = vpop.permute.xlu0 %1758 }
 0x342   : > { %v1824_v57 = vsel %vm1823_vm9, %v1807_v17, %v1759_v13  ;;  %v1808_v50 = vsel %vm1806_vm8, %v3247_v29, %v1697_v1 }
 0x343   : > { %1842 = vst.msk [vmem:[%s3915_s29] sm:$0xff] %vm1841_vm10, %v1824_v57 }
 0x345   : > { %v1761_v19 = vpop.permute.xlu1 %1760  ;;  %v1875_v39 = vpop.permute.xlu0 %1874 }
 0x346   : > { %v1825_v10 = vsel %vm1823_vm9, %v1808_v50, %v1761_v19  ;;  %v1922_v23 = vsel %vm1494_vm5, %v3489_v14, %v1875_v39 }
 0x347   : > { %1843 = vst.msk [vmem:[%s3915_s29 + $0x8] sm:$0xff] %vm1841_vm10, %v1825_v10 }
 0x348   : > { %1938 = vst.msk [vmem:[%s2724_s15] sm:$0xff] %vm1806_vm8, %v1922_v23 }
 0x349   : > { %v1877_v22 = vpop.permute.xlu1 %1876  ;;  %v1699_v2 = vpop.permute.xlu0 %1698 }
 0x34a   : > { %v1923_v38 = vsel %vm1494_vm5, %v3531_v18, %v1877_v22  ;;  %v1809_v29 = vsel %vm1806_vm8, %v3259_v36, %v1699_v2 }
 0x34b   : > { %1939 = vst.msk [vmem:[%s2724_s15 + $0x8] sm:$0xff] %vm1806_vm8, %v1923_v38 }
 0x34d   : > { %v1701_v34 = vpop.permute.xlu1 %1700  ;;  %v1763_v42 = vpop.permute.xlu0 %1762 }
 0x34e   : > { %v1826_v14 = vsel %vm1823_vm9, %v1809_v29, %v1763_v42  ;;  %v1810_v24 = vsel %vm1806_vm8, %v3272_v46, %v1701_v34 }
 0x34f   : > { %1844 = vst.msk [vmem:[%s3915_s29 + $0x10] sm:$0xff] %vm1841_vm10, %v1826_v14 }
 0x351   : > { %v1765_v8 = vpop.permute.xlu1 %1764  ;;  %v1879_v0 = vpop.permute.xlu0 %1878 }
 0x352   : > { %v1827_v18 = vsel %vm1823_vm9, %v1810_v24, %v1765_v8  ;;  %v1924_v40 = vsel %vm1494_vm5, %v3529_v15, %v1879_v0 }
 0x353   : > { %1845 = vst.msk [vmem:[%s3915_s29 + $0x18] sm:$0xff] %vm1841_vm10, %v1827_v18 }
 0x354   : > { %1940 = vst.msk [vmem:[%s2724_s15 + $0x10] sm:$0xff] %vm1806_vm8, %v1924_v40 }
 0x355   : > { %v1881_v36 = vpop.permute.xlu1 %1880  ;;  %v1703_v4 = vpop.permute.xlu0 %1702 }
 0x356   : > { %v1925_v6 = vsel %vm1494_vm5, %v3567_v5, %v1881_v36  ;;  %v1811_v46 = vsel %vm1806_vm8, %v3284_v53, %v1703_v4 }
 0x357   : > { %1941 = vst.msk [vmem:[%s2724_s15 + $0x18] sm:$0xff] %vm1806_vm8, %v1925_v6 }
 0x359   : > { %v1705_v47 = vpop.permute.xlu1 %1704  ;;  %v1767_v26 = vpop.permute.xlu0 %1766 }
 0x35a   : > { %v1828_v15 = vsel %vm1823_vm9, %v1811_v46, %v1767_v26  ;;  %v1812_v7 = vsel %vm1806_vm8, %v3292_v58, %v1705_v47 }
 0x35b   : > { %1846 = vst.msk [vmem:[%s3915_s29 + $0x20] sm:$0xff] %vm1841_vm10, %v1828_v15 }
 0x35d   : > { %v1769_v12 = vpop.permute.xlu1 %1768  ;;  %v1883_v37 = vpop.permute.xlu0 %1882 }
 0x35e   : > { %v1829_v5 = vsel %vm1823_vm9, %v1812_v7, %v1769_v12  ;;  %v1926_v28 = vsel %vm1494_vm5, %v3628_v45, %v1883_v37 }
 0x35f   : > { %1847 = vst.msk [vmem:[%s3915_s29 + $0x28] sm:$0xff] %vm1841_vm10, %v1829_v5 }
 0x360   : > { %1942 = vst.msk [vmem:[%s2724_s15 + $0x20] sm:$0xff] %vm1806_vm8, %v1926_v28 }
 0x361   : > { %v1885_v53 = vpop.permute.xlu1 %1884  ;;  %v1707_v41 = vpop.permute.xlu0 %1706 }
 0x362   : > { %v1927_v33 = vsel %vm1494_vm5, %v3647_v60, %v1885_v53  ;;  %v1813_v58 = vsel %vm1806_vm8, %v3296_v61, %v1707_v41 }
 0x363   : > { %1943 = vst.msk [vmem:[%s2724_s15 + $0x28] sm:$0xff] %vm1806_vm8, %v1927_v33 }
 0x365   : > { %v1709_v62 = vpop.permute.xlu1 %1708  ;;  %v1771_v31 = vpop.permute.xlu0 %1770 }
 0x366   : > { %v1830_v45 = vsel %vm1823_vm9, %v1813_v58, %v1771_v31  ;;  %v1814_v51 = vsel %vm1806_vm8, %v3304_v3, %v1709_v62 }
 0x367   : > { %1848 = vst.msk [vmem:[%s3915_s29 + $0x30] sm:$0xff] %vm1841_vm10, %v1830_v45 }
 0x369   : > { %v1773_v59 = vpop.permute.xlu1 %1772  ;;  %v1887_v44 = vpop.permute.xlu0 %1886 }
 0x36a   : > { %v1831_v60 = vsel %vm1823_vm9, %v1814_v51, %v1773_v59  ;;  %v1928_v56 = vsel %vm1494_vm5, %v3691_v63, %v1887_v44 }
 0x36b   : > { %1849 = vst.msk [vmem:[%s3915_s29 + $0x38] sm:$0xff] %vm1841_vm10, %v1831_v60 }
 0x36c   : > { %1944 = vst.msk [vmem:[%s2724_s15 + $0x30] sm:$0xff] %vm1806_vm8, %v1928_v56 }
 0x36d   : > { %v1889_v61 = vpop.permute.xlu1 %1888  ;;  %v1711_v17 = vpop.permute.xlu0 %1710 }
 0x36e   : > { %v1929_v1 = vsel %vm1494_vm5, %v3707_v9, %v1889_v61  ;;  %v1815_v3 = vsel %vm1806_vm8, %v3316_v11, %v1711_v17 }
 0x36f   : > { %1945 = vst.msk [vmem:[%s2724_s15 + $0x38] sm:$0xff] %vm1806_vm8, %v1929_v1 }
 0x371   : > { %v1713_v13 = vpop.permute.xlu1 %1712  ;;  %v1775_v57 = vpop.permute.xlu0 %1774 }
 0x372   : > { %v1832_v63 = vsel %vm1823_vm9, %v1815_v3, %v1775_v57  ;;  %v1816_v50 = vsel %vm1806_vm8, %v3324_v16, %v1713_v13 }
 0x373   : > { %1850 = vst.msk [vmem:[%s3915_s29 + $0x40] sm:$0xff] %vm1841_vm10, %v1832_v63 }
 0x375   : > { %v1777_v19 = vpop.permute.xlu1 %1776  ;;  %v1891_v39 = vpop.permute.xlu0 %1890 }
 0x376   : > { %v1833_v9 = vsel %vm1823_vm9, %v1816_v50, %v1777_v19  ;;  %v1930_v10 = vsel %vm1494_vm5, %v3752_v54, %v1891_v39 }
 0x377   : > { %1851 = vst.msk [vmem:[%s3915_s29 + $0x48] sm:$0xff] %vm1841_vm10, %v1833_v9 }
 0x378   : > { %1946 = vst.msk [vmem:[%s2724_s15 + $0x40] sm:$0xff] %vm1806_vm8, %v1930_v10 }
 0x379   : > { %v1893_v11 = vpop.permute.xlu1 %1892  ;;  %v1715_v23 = vpop.permute.xlu0 %1714 }
 0x37a   : > { %v1931_v22 = vsel %vm1494_vm5, %v3766_v27, %v1893_v11  ;;  %v1817_v16 = vsel %vm1806_vm8, %v3330_v20, %v1715_v23 }
 0x37b   : > { %1947 = vst.msk [vmem:[%s2724_s15 + $0x48] sm:$0xff] %vm1806_vm8, %v1931_v22 }
 0x37d   : > { %v1717_v2 = vpop.permute.xlu1 %1716  ;;  %v1779_v38 = vpop.permute.xlu0 %1778 }
 0x37e   : > { %v1834_v54 = vsel %vm1823_vm9, %v1817_v16, %v1779_v38  ;;  %v1818_v29 = vsel %vm1806_vm8, %v3335_v25, %v1717_v2 }
 0x37f   : > { %1852 = vst.msk [vmem:[%s3915_s29 + $0x50] sm:$0xff] %vm1841_vm10, %v1834_v54 }
 0x381   : > { %v1781_v34 = vpop.permute.xlu1 %1780 }
 0x382   : > { %v1835_v42 = vsel %vm1823_vm9, %v1818_v29, %v1781_v34 }
 0x383   : > { %1853 = vst.msk [vmem:[%s3915_s29 + $0x58] sm:$0xff] %vm1841_vm10, %v1835_v42 }
 0x386   : > { %v1895_v27 = vpop.permute.xlu0 %1894 }
 0x387   : > { %v1932_v20 = vsel %vm1494_vm5, %v3805_v21, %v1895_v27 }
 0x388   : > { %1948 = vst.msk [vmem:[%s2724_s15 + $0x50] sm:$0xff] %vm1806_vm8, %v1932_v20 }
 0x38a   : > { %v1897_v14 = vpop.permute.xlu1 %1896  ;;  %v1719_v24 = vpop.permute.xlu0 %1718 }
 0x38b   : > { %v1933_v8 = vsel %vm1494_vm5, %v3819_v43, %v1897_v14  ;;  %v1819_v25 = vsel %vm1806_vm8, %v3345_v35, %v1719_v24 }
 0x38c   : > { %1949 = vst.msk [vmem:[%s2724_s15 + $0x58] sm:$0xff] %vm1806_vm8, %v1933_v8 }
 0x38e   : > { %v1721_v0 = vpop.permute.xlu1 %1720  ;;  %v1783_v18 = vpop.permute.xlu0 %1782 }
 0x38f   : > { %v1836_v40 = vsel %vm1823_vm9, %v1819_v25, %v1783_v18  ;;  %v1820_v21 = vsel %vm1806_vm8, %v3356_v49, %v1721_v0 }
 0x390   : > { %1854 = vst.msk [vmem:[%s3915_s29 + $0x60] sm:$0xff] %vm1841_vm10, %v1836_v40 }
 0x392   : > { %v1785_v36 = vpop.permute.xlu1 %1784 }
 0x393   : > { %v1837_v4 = vsel %vm1823_vm9, %v1820_v21, %v1785_v36 }
 0x394   : > { %1855 = vst.msk [vmem:[%s3915_s29 + $0x68] sm:$0xff] %vm1841_vm10, %v1837_v4 }
 0x39a   : > { %v1899_v43 = vpop.permute.xlu0 %1898 }
 0x39b   : > { %v1934_v35 = vsel %vm1494_vm5, %v3850_v32, %v1899_v43  ;;  %v4102_v32 = vld [vmem:[#allocation12_spill] sm:$0xff] }
 0x39c   : > { %1950 = vst.msk [vmem:[%s2724_s15 + $0x60] sm:$0xff] %vm1806_vm8, %v1934_v35 }
 0x39e   : > { %v1901_v6 = vpop.permute.xlu1 %1900  ;;  %v1723_v46 = vpop.permute.xlu0 %1722 }
 0x39f   : > { %v1935_v47 = vsel %vm1494_vm5, %v3860_v30, %v1901_v6  ;;  %v1821_v49 = vsel %vm1806_vm8, %v3364_v55, %v1723_v46 }
 0x3a0   : > { %1951 = vst.msk [vmem:[%s2724_s15 + $0x68] sm:$0xff] %vm1806_vm8, %v1935_v47 }
 0x3a2   : > { %v1725_v26 = vpop.permute.xlu1 %1724  ;;  %v1787_v15 = vpop.permute.xlu0 %1786 }
 0x3a3   : > { %v1838_v7 = vsel %vm1823_vm9, %v1821_v49, %v1787_v15  ;;  %v1822_v12 = vsel %vm1806_vm8, %v4102_v32, %v1725_v26 }
 0x3a4   : > { %1856 = vst.msk [vmem:[%s3915_s29 + $0x70] sm:$0xff] %vm1841_vm10, %v1838_v7 }
 0x3a6   : > { %v1789_v37 = vpop.permute.xlu1 %1788 }
 0x3a7   : > { %v1839_v5 = vsel %vm1823_vm9, %v1822_v12, %v1789_v37 }
 0x3a8   : > { %1857 = vst.msk [vmem:[%s3915_s29 + $0x78] sm:$0xff] %vm1841_vm10, %v1839_v5 }
 0x3ae   : > { %v1903_v30 = vpop.permute.xlu0 %1902 }
 0x3af   : > { %v1936_v28 = vsel %vm1494_vm5, %v3890_v52, %v1903_v30 }
 0x3b0   : > { %1952 = vst.msk [vmem:[%s2724_s15 + $0x70] sm:$0xff] %vm1806_vm8, %v1936_v28 }
 0x3b2   : > { %v1905_v55 = vpop.permute.xlu1 %1904 }
 0x3b3   : > { %v1937_v53 = vsel %vm1494_vm5, %v3900_v48, %v1905_v55 }
 0x3b4   : > { %1953 = vst.msk [vmem:[%s2724_s15 + $0x78] sm:$0xff] %vm1806_vm8, %v1937_v53 }
 0x3b5 PF: > { %s19_s25 = sadd.s32 1, %s2525_s25   ;;  %s4103_s18 = smov %s2501_s19 }
 0x3b6   : > { %p16_p11 = scmp.ge.s32.totalorder %s19_s25, 6   ;;  %s4104_s19 = smov %s2505_s20 }
 0x3b7   : > { %s4105_s20 = smov %s2656_s30  ;;  %s4106_s21 = smov %s2517_s23 }
 0x3b8   : > { %s4107_s22 = smov %s2521_s24  ;;  %s4108_s23 = smov %s4111_s12 }
 0x3b9   : > { %s4109_s24 = smov %s4115_s13  ;;  %18 = sbr.rel (!%p16_p11) target bundleno = 6 (0x6), region = 106 }
 0x3c0   :  { %1976 = vsyncpa [#allocation7], 1 }
 0x3c1   :  { %1978 = vsyncpa [#allocation7 + $0x1], 1 }
 0x3c2   :  { %1979 = vsyncpa [#allocation8], 1 }
 0x3c3   :  { %1981 = vsyncpa [#allocation8 + $0x1], 1 }

</bundles_post_ra>
